<compile_context>
chip_gen: v5e
topology: v5e:2x2
jax: 0.10.0
libtpu: 0.0.40
codegen_flags: <defaults>
</compile_context>

<pallas_src>
import math

import jax
import jax.numpy as jnp
from jax.experimental import pallas as pl
from jax.experimental.pallas import tpu as pltpu

# ---- sizes (small, consistent with the module's forward) -------------------
B, L, H = 2, 16, 32          # batch, max_length, bert_hidden_size
HEADS, HD, FF = 2, 16, 64    # attention heads, head dim, intermediate size
VOCAB, NTYPE, C = 30, 2, 4   # vocab, token types, class_num
LN_EPS = 1e-12
LANES = 128
BL = B * L                   # 32
NSTACK = HEADS * B * L       # 64

# ---- packed-parameter slab layout (all row offsets are multiples of 16 -> ---
# ---- bf16 sublane-tile aligned static ref slices) ---------------------------
R_WQKV = 0                    # (H, 3H)
R_WO = R_WQKV + H             # (H, H)   rows [h*HD:(h+1)*HD] = head h
R_W1 = R_WO + H               # (H, FF)
R_W2 = R_W1 + H               # (FF, H)
R_WP = R_W2 + FF              # (H, H)   pooler
R_CLS = R_WP + H              # (H, H)   cls_mlp
R_ENT = R_CLS + H             # (H, H)   entity_mlp
R_DW = R_ENT + H              # (3H, C)  dense
MAT_ROWS = R_DW + 3 * H       # 352

(V_LN0G, V_LN0B, V_BQKV, V_BO, V_LN1G, V_LN1B, V_B1, V_B2,
 V_LN2G, V_LN2B, V_BP, V_CLSB, V_ENTB, V_DB) = range(14)
VEC_ROWS = 16


# ---------------------------------------------------------------------------
# Fused kernel: BERT-style encoder + pooler + R-BERT head + CE loss
# ---------------------------------------------------------------------------
def _rbert_kernel(emb_ref, bias_ref, sel_ref, onehot_ref, mat_ref, vec_ref,
                  out_ref):
    f32 = jnp.float32
    bf16 = jnp.bfloat16

    def vrow(r, width):                          # (1, width) free static slice
        return vec_ref[r:r + 1, 0:width]

    def ln(v, gr, br):                           # LayerNorm in f32
        mu = jnp.mean(v, axis=-1, keepdims=True)
        var = jnp.mean((v - mu) ** 2, axis=-1, keepdims=True)
        return (v - mu) * jax.lax.rsqrt(var + LN_EPS) * vrow(gr, H) + vrow(br, H)

    def wdot(x, row, in_dim, out_dim):           # activation @ bf16 weight block
        return jnp.dot(x.astype(bf16), mat_ref[row:row + in_dim, 0:out_dim],
                       preferred_element_type=f32)

    # ---- embeddings LN + fused QKV projection (whole batch, one matmul) ----
    x = ln(emb_ref[...], V_LN0G, V_LN0B)                              # (BL, H)
    qkv = wdot(x, R_WQKV, H, 3 * H) + vrow(V_BQKV, 3 * H)             # (BL, 3H)

    # ---- block-diagonal batched attention: all (batch, head) blocks at once
    # stack row order: [head0 | b0 rows, b1 rows ; head1 | b0 rows, b1 rows]
    q = jnp.concatenate([qkv[:, 0:HD], qkv[:, HD:2 * HD]], axis=0)            # (64, HD)
    k = jnp.concatenate([qkv[:, 2 * HD:3 * HD], qkv[:, 3 * HD:4 * HD]], axis=0)
    v = jnp.concatenate([qkv[:, 4 * HD:5 * HD], qkv[:, 5 * HD:6 * HD]], axis=0)

    s = pl.dot(q, k, trans_b=True) * (1.0 / math.sqrt(HD)) + bias_ref[...]    # (64, 64)
    s = s - jnp.max(s, axis=-1, keepdims=True)
    p = jnp.exp(s)
    # TODO(synk): approx reciprocal (~1e-3 rel err) vs. exact torch.softmax.
    p = p * pl.reciprocal(jnp.sum(p, axis=-1, keepdims=True), approx=True)
    ctx = jnp.dot(p, v, preferred_element_type=f32)                           # (64, HD)

    attn = (wdot(ctx[0:BL, :], R_WO, HD, H)             # head-0 rows of W_O
            + wdot(ctx[BL:2 * BL, :], R_WO + HD, HD, H)  # head-1 rows of W_O
            + vrow(V_BO, H))                                                  # (BL, H)

    # ---- residual + FFN + final LN (whole batch at once) -------------------
    h1 = ln(x + attn, V_LN1G, V_LN1B)
    inter = jax.nn.gelu(wdot(h1, R_W1, H, FF) + vrow(V_B1, FF))
    ffn = wdot(inter, R_W2, FF, H) + vrow(V_B2, H)
    h2 = ln(h1 + ffn, V_LN2G, V_LN2B)                                         # (BL, H)

    # ---- CLS rows + both masked entity averages: ONE selection matmul ------
    # sel rows: [cls_b0, cls_b1, e1_b0/len, e1_b1/len, e2_b0/len, e2_b1/len]
    gathered = jnp.dot(sel_ref[...], h2, preferred_element_type=f32)          # (3B, H)
    cls_tok = gathered[0:B, :]
    ent_avg = gathered[B:3 * B, :]

    pooled = jnp.tanh(wdot(cls_tok, R_WP, H, H) + vrow(V_BP, H))              # pooler
    cls = jnp.tanh(wdot(pooled, R_CLS, H, H) + vrow(V_CLSB, H))               # cls_mlp
    ent = jnp.tanh(wdot(ent_avg, R_ENT, H, H) + vrow(V_ENTB, H))              # entity_mlp
    e1 = ent[0:B, :]
    e2 = ent[B:2 * B, :]

    # dense(concat([cls, e1, e2])) == sum of three H-row-block matmuls
    logits = (wdot(cls, R_DW, H, C)
              + wdot(e1, R_DW + H, H, C)
              + wdot(e2, R_DW + 2 * H, H, C)
              + vrow(V_DB, C))                                                # (B, C)

    # ---- CrossEntropyLoss (mean reduction) ---------------------------------
    mx = jnp.max(logits, axis=-1, keepdims=True)
    lse = mx + jnp.log(jnp.sum(jnp.exp(logits - mx), axis=-1, keepdims=True))
    loss = -jnp.sum(onehot_ref[...] * (logits - lse)) * (1.0 / B)

    # ---- single merged lane-dense (8, 128) output ---------------------------
    out_ref[...] = jnp.zeros((8, LANES), f32)
    out_ref[0:B, 0:C] = logits
    out_ref[B:B + 1, 0:C] = jnp.broadcast_to(loss, (1, C))


def _rbert_pallas(emb_flat, attn_bias, sel, onehot, mat, vec):
    vmem = pl.BlockSpec(memory_space=pltpu.MemorySpace.VMEM)
    return pl.pallas_call(
        _rbert_kernel,
        in_specs=[vmem, vmem, vmem, vmem, vmem, vmem],
        out_specs=pl.BlockSpec(memory_space=pltpu.MemorySpace.VMEM),
        out_shape=jax.ShapeDtypeStruct((8, LANES), jnp.float32),
    )(emb_flat, attn_bias, sel, onehot, mat, vec)


# ---------------------------------------------------------------------------
# Wrapper-side precomputed operands (cheap XLA glue)
# ---------------------------------------------------------------------------
def _build_attn_bias(attention_mask):
    """(64, 64) additive mask: batch/head block-diagonal + key padding bias."""
    idx = jnp.arange(NSTACK)
    blk = idx // L                                   # block id = head * B + batch
    same = blk[:, None] == blk[None, :]
    key_b = blk % B
    key_pos = idx % L
    key_ok = attention_mask[key_b, key_pos] > 0.5
    allowed = same & key_ok[None, :]
    return jnp.where(allowed, 0.0, -1e9).astype(jnp.float32)


def _build_selector(mask):
    """(3B, B*L) selection matrix: rows [cls_b..., e1_b.../len, e2_b.../len]."""
    m = mask.astype(jnp.float32)                     # (B, L)
    e1 = (m == 4.0).astype(jnp.float32)
    e2 = (m == 5.0).astype(jnp.float32)
    # TODO(synk): empty entity span -> zero row; reference torch.div gives NaN.
    e1 = e1 / jnp.maximum(jnp.sum(e1, axis=-1, keepdims=True), 1.0)
    e2 = e2 / jnp.maximum(jnp.sum(e2, axis=-1, keepdims=True), 1.0)
    cls = jnp.broadcast_to((jnp.arange(L) == 0).astype(jnp.float32), (B, L))
    eye = jnp.eye(B, dtype=jnp.float32)

    def blockify(rows):                              # (B, L) -> (B, B*L)
        return (eye[:, :, None] * rows[:, None, :]).reshape(B, B * L)

    return jnp.concatenate([blockify(cls), blockify(e1), blockify(e2)], axis=0)


# ---------------------------------------------------------------------------
# Parameter init (deterministic, matches shapes / init_parameters of R_Bert)
# ---------------------------------------------------------------------------
def _xavier_normal(key, shape):
    std = math.sqrt(2.0 / (shape[0] + shape[1]))
    return std * jax.random.normal(key, shape, dtype=jnp.float32)


def _normal02(key, shape):
    return 0.02 * jax.random.normal(key, shape, dtype=jnp.float32)


def init_params(key):
    ks = iter(jax.random.split(key, 32))
    p = {}
    p["word_emb"] = _normal02(next(ks), (VOCAB, H))
    p["pos_emb"] = _normal02(next(ks), (L, H))
    p["type_emb"] = _normal02(next(ks), (NTYPE, H))
    for name, shape in [("wq", (H, H)), ("wk", (H, H)), ("wv", (H, H)),
                        ("wo", (H, H)), ("w1", (H, FF)), ("w2", (FF, H)),
                        ("wp", (H, H))]:
        p[name] = _normal02(next(ks), shape)
    for name, dim in [("bq", H), ("bk", H), ("bv", H), ("bo", H),
                      ("b1", FF), ("b2", H), ("bp", H)]:
        p[name] = jnp.zeros((1, dim), jnp.float32)
    for name in ["ln0", "ln1", "ln2"]:
        p[name + "g"] = jnp.ones((1, H), jnp.float32)
        p[name + "b"] = jnp.zeros((1, H), jnp.float32)
    # R-BERT head: xavier_normal weights, zero biases (as in init_parameters)
    p["clsw"] = _xavier_normal(next(ks), (H, H))
    p["clsb"] = jnp.zeros((1, H), jnp.float32)
    p["entw"] = _xavier_normal(next(ks), (H, H))
    p["entb"] = jnp.zeros((1, H), jnp.float32)
    p["dw"] = _xavier_normal(next(ks), (3 * H, C))
    p["db"] = jnp.zeros((1, C), jnp.float32)
    return p


def pack_params(p):
    """Pack parameters into a bf16 matrix slab + f32 bias/LN slab."""
    wqkv = jnp.concatenate([p["wq"], p["wk"], p["wv"]], axis=1)   # (H, 3H)
    bqkv = jnp.concatenate([p["bq"], p["bk"], p["bv"]], axis=1)   # (1, 3H)

    mat = jnp.zeros((MAT_ROWS, LANES), jnp.float32)
    for r, w in [(R_WQKV, wqkv), (R_WO, p["wo"]), (R_W1, p["w1"]),
                 (R_W2, p["w2"]), (R_WP, p["wp"]), (R_CLS, p["clsw"]),
                 (R_ENT, p["entw"]), (R_DW, p["dw"])]:
        mat = mat.at[r:r + w.shape[0], 0:w.shape[1]].set(w)

    vec = jnp.zeros((VEC_ROWS, LANES), jnp.float32)
    for r, w in [(V_LN0G, p["ln0g"]), (V_LN0B, p["ln0b"]), (V_BQKV, bqkv),
                 (V_BO, p["bo"]), (V_LN1G, p["ln1g"]), (V_LN1B, p["ln1b"]),
                 (V_B1, p["b1"]), (V_B2, p["b2"]), (V_LN2G, p["ln2g"]),
                 (V_LN2B, p["ln2b"]), (V_BP, p["bp"]), (V_CLSB, p["clsb"]),
                 (V_ENTB, p["entb"]), (V_DB, p["db"])]:
        vec = vec.at[r:r + 1, 0:w.shape[1]].set(w)
    return {"mat": mat.astype(jnp.bfloat16), "vec": vec}


# ---------------------------------------------------------------------------
# Full forward (mirrors R_Bert.forward)
# ---------------------------------------------------------------------------
def r_bert_forward(params, packed, data, label):
    input_ids = data[:, 0, :]                              # (B, L) int
    mask = data[:, 1, :]                                   # (B, L) int
    attention_mask = (mask > 0).astype(jnp.float32)        # mask.gt(0).float()
    token_type_ids = (mask > -1).astype(jnp.int32)         # mask.gt(-1).long()

    # embedding lookup (plain JAX glue), everything else in one fused kernel
    emb = (params["word_emb"][input_ids]
           + params["pos_emb"][None, :, :]
           + params["type_emb"][token_type_ids]).astype(jnp.float32)  # (B, L, H)
    emb_flat = emb.reshape(BL, H)

    attn_bias = _build_attn_bias(attention_mask)           # (64, 64)
    sel = _build_selector(mask)                            # (3B, B*L)
    onehot = jax.nn.one_hot(label, C, dtype=jnp.float32)   # (B, C)

    out = _rbert_pallas(emb_flat, attn_bias, sel, onehot,
                        packed["mat"], packed["vec"])
    logits = out[0:B, 0:C]
    loss = out[B, 0]
    return loss, logits


if __name__ == "__main__":
    key = jax.random.PRNGKey(0)
    k_param, k_ids = jax.random.split(key)

    params = init_params(k_param)
    packed = pack_params(params)

    input_ids = jax.random.randint(k_ids, (B, L), 0, VOCAB, dtype=jnp.int32)
    # mask values: 0 = padding, 1 = ordinary token, 4 = entity-1, 5 = entity-2
    mask = jnp.array(
        [[1, 1, 4, 4, 1, 5, 5, 1, 1, 1, 1, 1, 0, 0, 0, 0],
         [1, 4, 4, 4, 1, 1, 5, 5, 5, 1, 1, 0, 0, 0, 0, 0]], dtype=jnp.int32)
    data = jnp.stack([input_ids, mask], axis=1)            # (B, 2, L)
    label = jnp.array([1, 3], dtype=jnp.int32)

    fwd = jax.jit(r_bert_forward)
    loss, logits = fwd(params, packed, data, label)
    jax.block_until_ready((loss, logits))

    assert logits.shape == (B, C)
    assert bool(jnp.isfinite(loss)) and bool(jnp.all(jnp.isfinite(logits)))
    print("KERNEL_OK")
</pallas_src>

<mosaic_0001>
module attributes {stable_mosaic.version = 11 : i64} {
  func.func @_rbert_kernel(%arg0: memref<32x32xf32, #tpu.memory_space<vmem>>, %arg1: memref<64x64xf32, #tpu.memory_space<vmem>>, %arg2: memref<6x32xf32, #tpu.memory_space<vmem>>, %arg3: memref<2x4xf32, #tpu.memory_space<vmem>>, %arg4: memref<352x128xbf16, #tpu.memory_space<vmem>>, %arg5: memref<16x128xf32, #tpu.memory_space<vmem>>, %arg6: memref<8x128xf32, #tpu.memory_space<vmem>>) attributes {dimension_semantics = [], scalar_prefetch = 0 : i64, scratch_operands = 0 : i64, tpu.core_type = #tpu.core_type<tc>} {
    %c0 = arith.constant 0 : index
    %c0_0 = arith.constant 0 : index
    %0 = vector.load %arg0[%c0, %c0_0] : memref<32x32xf32, #tpu.memory_space<vmem>>, vector<32x32xf32>
    %cst = arith.constant dense<0.000000e+00> : vector<32xf32>
    %1 = vector.multi_reduction <add>, %0, %cst [1] : vector<32x32xf32> to vector<32xf32>
    %2 = vector.shape_cast %1 : vector<32xf32> to vector<32x1xf32>
    %cst_1 = arith.constant 3.200000e+01 : f32
    %3 = vector.broadcast %cst_1 : f32 to vector<32x1xf32>
    %4 = arith.divf %2, %3 : vector<32x1xf32>
    %5 = vector.broadcast %4 : vector<32x1xf32> to vector<32x32xf32>
    %6 = arith.subf %0, %5 : vector<32x32xf32>
    %7 = arith.mulf %6, %6 : vector<32x32xf32>
    %cst_2 = arith.constant dense<0.000000e+00> : vector<32xf32>
    %8 = vector.multi_reduction <add>, %7, %cst_2 [1] : vector<32x32xf32> to vector<32xf32>
    %9 = vector.shape_cast %8 : vector<32xf32> to vector<32x1xf32>
    %cst_3 = arith.constant 3.200000e+01 : f32
    %10 = vector.broadcast %cst_3 : f32 to vector<32x1xf32>
    %11 = arith.divf %9, %10 : vector<32x1xf32>
    %12 = vector.broadcast %4 : vector<32x1xf32> to vector<32x32xf32>
    %13 = arith.subf %0, %12 : vector<32x32xf32>
    %cst_4 = arith.constant 9.99999996E-13 : f32
    %14 = vector.broadcast %cst_4 : f32 to vector<32x1xf32>
    %15 = arith.addf %11, %14 : vector<32x1xf32>
    %16 = math.rsqrt %15 : vector<32x1xf32>
    %17 = vector.broadcast %16 : vector<32x1xf32> to vector<32x32xf32>
    %18 = arith.mulf %13, %17 : vector<32x32xf32>
    %c0_5 = arith.constant 0 : index
    %c0_6 = arith.constant 0 : index
    %19 = vector.load %arg5[%c0_5, %c0_6] : memref<16x128xf32, #tpu.memory_space<vmem>>, vector<1x32xf32>
    %20 = vector.broadcast %19 : vector<1x32xf32> to vector<32x32xf32>
    %21 = arith.mulf %18, %20 : vector<32x32xf32>
    %c1 = arith.constant 1 : index
    %c0_7 = arith.constant 0 : index
    %22 = vector.load %arg5[%c1, %c0_7] : memref<16x128xf32, #tpu.memory_space<vmem>>, vector<1x32xf32>
    %23 = vector.broadcast %22 : vector<1x32xf32> to vector<32x32xf32>
    %24 = arith.addf %21, %23 : vector<32x32xf32>
    %25 = arith.truncf %24 : vector<32x32xf32> to vector<32x32xbf16>
    %c0_8 = arith.constant 0 : index
    %c0_9 = arith.constant 0 : index
    %26 = vector.load %arg4[%c0_8, %c0_9] : memref<352x128xbf16, #tpu.memory_space<vmem>>, vector<32x96xbf16>
    %cst_10 = arith.constant dense<0.000000e+00> : vector<32x96xf32>
    %27 = tpu.matmul %25, %26, %cst_10 {dimension_numbers = #tpu.dot_dimension_numbers<[1], [0], [0], [1], [0, 0, 1, 1], [], []>} : vector<32x32xbf16>, vector<32x96xbf16>, vector<32x96xf32> -> vector<32x96xf32>
    %c2 = arith.constant 2 : index
    %c0_11 = arith.constant 0 : index
    %28 = vector.load %arg5[%c2, %c0_11] : memref<16x128xf32, #tpu.memory_space<vmem>>, vector<1x96xf32>
    %29 = vector.broadcast %28 : vector<1x96xf32> to vector<32x96xf32>
    %30 = arith.addf %27, %29 : vector<32x96xf32>
    %31 = vector.extract_strided_slice %30 {offsets = [0, 0], sizes = [32, 16], strides = [1, 1]} : vector<32x96xf32> to vector<32x16xf32>
    %32 = vector.extract_strided_slice %30 {offsets = [0, 16], sizes = [32, 16], strides = [1, 1]} : vector<32x96xf32> to vector<32x16xf32>
    %33 = tpu.concatenate %31, %32 in 0 : vector<32x16xf32>, vector<32x16xf32> -> vector<64x16xf32>
    %34 = vector.extract_strided_slice %30 {offsets = [0, 32], sizes = [32, 16], strides = [1, 1]} : vector<32x96xf32> to vector<32x16xf32>
    %35 = vector.extract_strided_slice %30 {offsets = [0, 48], sizes = [32, 16], strides = [1, 1]} : vector<32x96xf32> to vector<32x16xf32>
    %36 = tpu.concatenate %34, %35 in 0 : vector<32x16xf32>, vector<32x16xf32> -> vector<64x16xf32>
    %37 = vector.extract_strided_slice %30 {offsets = [0, 64], sizes = [32, 16], strides = [1, 1]} : vector<32x96xf32> to vector<32x16xf32>
    %38 = vector.extract_strided_slice %30 {offsets = [0, 80], sizes = [32, 16], strides = [1, 1]} : vector<32x96xf32> to vector<32x16xf32>
    %39 = tpu.concatenate %37, %38 in 0 : vector<32x16xf32>, vector<32x16xf32> -> vector<64x16xf32>
    %cst_12 = arith.constant dense<0.000000e+00> : vector<64x64xf32>
    %40 = tpu.matmul %33, %36, %cst_12 {dimension_numbers = #tpu.dot_dimension_numbers<[1], [1], [0], [0], [0, 0, 1, 0], [], []>} : vector<64x16xf32>, vector<64x16xf32>, vector<64x64xf32> -> vector<64x64xf32>
    %cst_13 = arith.constant 2.500000e-01 : f32
    %41 = vector.broadcast %cst_13 : f32 to vector<64x64xf32>
    %42 = arith.mulf %40, %41 : vector<64x64xf32>
    %c0_14 = arith.constant 0 : index
    %c0_15 = arith.constant 0 : index
    %43 = vector.load %arg1[%c0_14, %c0_15] : memref<64x64xf32, #tpu.memory_space<vmem>>, vector<64x64xf32>
    %44 = arith.addf %42, %43 : vector<64x64xf32>
    %cst_16 = arith.constant dense<0xFF800000> : vector<64xf32>
    %45 = vector.multi_reduction <maximumf>, %44, %cst_16 [1] : vector<64x64xf32> to vector<64xf32>
    %46 = vector.shape_cast %45 : vector<64xf32> to vector<64x1xf32>
    %47 = vector.broadcast %46 : vector<64x1xf32> to vector<64x64xf32>
    %48 = arith.subf %44, %47 : vector<64x64xf32>
    %49 = math.exp %48 : vector<64x64xf32>
    %cst_17 = arith.constant dense<0.000000e+00> : vector<64xf32>
    %50 = vector.multi_reduction <add>, %49, %cst_17 [1] : vector<64x64xf32> to vector<64xf32>
    %51 = vector.shape_cast %50 : vector<64xf32> to vector<64x1xf32>
    %52 = tpu.reciprocal %51 {approx = true} : vector<64x1xf32> -> vector<64x1xf32>
    %53 = vector.broadcast %52 : vector<64x1xf32> to vector<64x64xf32>
    %54 = arith.mulf %49, %53 : vector<64x64xf32>
    %cst_18 = arith.constant dense<0.000000e+00> : vector<64x16xf32>
    %55 = tpu.matmul %54, %39, %cst_18 {dimension_numbers = #tpu.dot_dimension_numbers<[1], [0], [0], [1], [0, 0, 1, 1], [], []>} : vector<64x64xf32>, vector<64x16xf32>, vector<64x16xf32> -> vector<64x16xf32>
    %56 = vector.extract_strided_slice %55 {offsets = [0, 0], sizes = [32, 16], strides = [1, 1]} : vector<64x16xf32> to vector<32x16xf32>
    %57 = arith.truncf %56 : vector<32x16xf32> to vector<32x16xbf16>
    %c32 = arith.constant 32 : index
    %c0_19 = arith.constant 0 : index
    %58 = vector.load %arg4[%c32, %c0_19] : memref<352x128xbf16, #tpu.memory_space<vmem>>, vector<16x32xbf16>
    %cst_20 = arith.constant dense<0.000000e+00> : vector<32x32xf32>
    %59 = tpu.matmul %57, %58, %cst_20 {dimension_numbers = #tpu.dot_dimension_numbers<[1], [0], [0], [1], [0, 0, 1, 1], [], []>} : vector<32x16xbf16>, vector<16x32xbf16>, vector<32x32xf32> -> vector<32x32xf32>
    %60 = vector.extract_strided_slice %55 {offsets = [32, 0], sizes = [32, 16], strides = [1, 1]} : vector<64x16xf32> to vector<32x16xf32>
    %61 = arith.truncf %60 : vector<32x16xf32> to vector<32x16xbf16>
    %c48 = arith.constant 48 : index
    %c0_21 = arith.constant 0 : index
    %62 = vector.load %arg4[%c48, %c0_21] : memref<352x128xbf16, #tpu.memory_space<vmem>>, vector<16x32xbf16>
    %cst_22 = arith.constant dense<0.000000e+00> : vector<32x32xf32>
    %63 = tpu.matmul %61, %62, %cst_22 {dimension_numbers = #tpu.dot_dimension_numbers<[1], [0], [0], [1], [0, 0, 1, 1], [], []>} : vector<32x16xbf16>, vector<16x32xbf16>, vector<32x32xf32> -> vector<32x32xf32>
    %64 = arith.addf %59, %63 : vector<32x32xf32>
    %c3 = arith.constant 3 : index
    %c0_23 = arith.constant 0 : index
    %65 = vector.load %arg5[%c3, %c0_23] : memref<16x128xf32, #tpu.memory_space<vmem>>, vector<1x32xf32>
    %66 = vector.broadcast %65 : vector<1x32xf32> to vector<32x32xf32>
    %67 = arith.addf %64, %66 : vector<32x32xf32>
    %68 = arith.addf %24, %67 : vector<32x32xf32>
    %cst_24 = arith.constant dense<0.000000e+00> : vector<32xf32>
    %69 = vector.multi_reduction <add>, %68, %cst_24 [1] : vector<32x32xf32> to vector<32xf32>
    %70 = vector.shape_cast %69 : vector<32xf32> to vector<32x1xf32>
    %cst_25 = arith.constant 3.200000e+01 : f32
    %71 = vector.broadcast %cst_25 : f32 to vector<32x1xf32>
    %72 = arith.divf %70, %71 : vector<32x1xf32>
    %73 = vector.broadcast %72 : vector<32x1xf32> to vector<32x32xf32>
    %74 = arith.subf %68, %73 : vector<32x32xf32>
    %75 = arith.mulf %74, %74 : vector<32x32xf32>
    %cst_26 = arith.constant dense<0.000000e+00> : vector<32xf32>
    %76 = vector.multi_reduction <add>, %75, %cst_26 [1] : vector<32x32xf32> to vector<32xf32>
    %77 = vector.shape_cast %76 : vector<32xf32> to vector<32x1xf32>
    %cst_27 = arith.constant 3.200000e+01 : f32
    %78 = vector.broadcast %cst_27 : f32 to vector<32x1xf32>
    %79 = arith.divf %77, %78 : vector<32x1xf32>
    %80 = vector.broadcast %72 : vector<32x1xf32> to vector<32x32xf32>
    %81 = arith.subf %68, %80 : vector<32x32xf32>
    %cst_28 = arith.constant 9.99999996E-13 : f32
    %82 = vector.broadcast %cst_28 : f32 to vector<32x1xf32>
    %83 = arith.addf %79, %82 : vector<32x1xf32>
    %84 = math.rsqrt %83 : vector<32x1xf32>
    %85 = vector.broadcast %84 : vector<32x1xf32> to vector<32x32xf32>
    %86 = arith.mulf %81, %85 : vector<32x32xf32>
    %c4 = arith.constant 4 : index
    %c0_29 = arith.constant 0 : index
    %87 = vector.load %arg5[%c4, %c0_29] : memref<16x128xf32, #tpu.memory_space<vmem>>, vector<1x32xf32>
    %88 = vector.broadcast %87 : vector<1x32xf32> to vector<32x32xf32>
    %89 = arith.mulf %86, %88 : vector<32x32xf32>
    %c5 = arith.constant 5 : index
    %c0_30 = arith.constant 0 : index
    %90 = vector.load %arg5[%c5, %c0_30] : memref<16x128xf32, #tpu.memory_space<vmem>>, vector<1x32xf32>
    %91 = vector.broadcast %90 : vector<1x32xf32> to vector<32x32xf32>
    %92 = arith.addf %89, %91 : vector<32x32xf32>
    %93 = arith.truncf %92 : vector<32x32xf32> to vector<32x32xbf16>
    %c64 = arith.constant 64 : index
    %c0_31 = arith.constant 0 : index
    %94 = vector.load %arg4[%c64, %c0_31] : memref<352x128xbf16, #tpu.memory_space<vmem>>, vector<32x64xbf16>
    %cst_32 = arith.constant dense<0.000000e+00> : vector<32x64xf32>
    %95 = tpu.matmul %93, %94, %cst_32 {dimension_numbers = #tpu.dot_dimension_numbers<[1], [0], [0], [1], [0, 0, 1, 1], [], []>} : vector<32x32xbf16>, vector<32x64xbf16>, vector<32x64xf32> -> vector<32x64xf32>
    %c6 = arith.constant 6 : index
    %c0_33 = arith.constant 0 : index
    %96 = vector.load %arg5[%c6, %c0_33] : memref<16x128xf32, #tpu.memory_space<vmem>>, vector<1x64xf32>
    %97 = vector.broadcast %96 : vector<1x64xf32> to vector<32x64xf32>
    %98 = arith.addf %95, %97 : vector<32x64xf32>
    %99 = arith.mulf %98, %98 : vector<32x64xf32>
    %100 = arith.mulf %98, %99 : vector<32x64xf32>
    %cst_34 = arith.constant 4.471500e-02 : f32
    %101 = vector.broadcast %cst_34 : f32 to vector<32x64xf32>
    %102 = arith.mulf %101, %100 : vector<32x64xf32>
    %103 = arith.addf %98, %102 : vector<32x64xf32>
    %cst_35 = arith.constant 0.797884583 : f32
    %104 = vector.broadcast %cst_35 : f32 to vector<32x64xf32>
    %105 = arith.mulf %104, %103 : vector<32x64xf32>
    %106 = math.tanh %105 : vector<32x64xf32>
    %cst_36 = arith.constant 1.000000e+00 : f32
    %107 = vector.broadcast %cst_36 : f32 to vector<32x64xf32>
    %108 = arith.addf %107, %106 : vector<32x64xf32>
    %cst_37 = arith.constant 5.000000e-01 : f32
    %109 = vector.broadcast %cst_37 : f32 to vector<32x64xf32>
    %110 = arith.mulf %109, %108 : vector<32x64xf32>
    %111 = arith.mulf %98, %110 : vector<32x64xf32>
    %112 = arith.truncf %111 : vector<32x64xf32> to vector<32x64xbf16>
    %c96 = arith.constant 96 : index
    %c0_38 = arith.constant 0 : index
    %113 = vector.load %arg4[%c96, %c0_38] : memref<352x128xbf16, #tpu.memory_space<vmem>>, vector<64x32xbf16>
    %cst_39 = arith.constant dense<0.000000e+00> : vector<32x32xf32>
    %114 = tpu.matmul %112, %113, %cst_39 {dimension_numbers = #tpu.dot_dimension_numbers<[1], [0], [0], [1], [0, 0, 1, 1], [], []>} : vector<32x64xbf16>, vector<64x32xbf16>, vector<32x32xf32> -> vector<32x32xf32>
    %c7 = arith.constant 7 : index
    %c0_40 = arith.constant 0 : index
    %115 = vector.load %arg5[%c7, %c0_40] : memref<16x128xf32, #tpu.memory_space<vmem>>, vector<1x32xf32>
    %116 = vector.broadcast %115 : vector<1x32xf32> to vector<32x32xf32>
    %117 = arith.addf %114, %116 : vector<32x32xf32>
    %118 = arith.addf %92, %117 : vector<32x32xf32>
    %cst_41 = arith.constant dense<0.000000e+00> : vector<32xf32>
    %119 = vector.multi_reduction <add>, %118, %cst_41 [1] : vector<32x32xf32> to vector<32xf32>
    %120 = vector.shape_cast %119 : vector<32xf32> to vector<32x1xf32>
    %cst_42 = arith.constant 3.200000e+01 : f32
    %121 = vector.broadcast %cst_42 : f32 to vector<32x1xf32>
    %122 = arith.divf %120, %121 : vector<32x1xf32>
    %123 = vector.broadcast %122 : vector<32x1xf32> to vector<32x32xf32>
    %124 = arith.subf %118, %123 : vector<32x32xf32>
    %125 = arith.mulf %124, %124 : vector<32x32xf32>
    %cst_43 = arith.constant dense<0.000000e+00> : vector<32xf32>
    %126 = vector.multi_reduction <add>, %125, %cst_43 [1] : vector<32x32xf32> to vector<32xf32>
    %127 = vector.shape_cast %126 : vector<32xf32> to vector<32x1xf32>
    %cst_44 = arith.constant 3.200000e+01 : f32
    %128 = vector.broadcast %cst_44 : f32 to vector<32x1xf32>
    %129 = arith.divf %127, %128 : vector<32x1xf32>
    %130 = vector.broadcast %122 : vector<32x1xf32> to vector<32x32xf32>
    %131 = arith.subf %118, %130 : vector<32x32xf32>
    %cst_45 = arith.constant 9.99999996E-13 : f32
    %132 = vector.broadcast %cst_45 : f32 to vector<32x1xf32>
    %133 = arith.addf %129, %132 : vector<32x1xf32>
    %134 = math.rsqrt %133 : vector<32x1xf32>
    %135 = vector.broadcast %134 : vector<32x1xf32> to vector<32x32xf32>
    %136 = arith.mulf %131, %135 : vector<32x32xf32>
    %c8 = arith.constant 8 : index
    %c0_46 = arith.constant 0 : index
    %137 = vector.load %arg5[%c8, %c0_46] : memref<16x128xf32, #tpu.memory_space<vmem>>, vector<1x32xf32>
    %138 = vector.broadcast %137 : vector<1x32xf32> to vector<32x32xf32>
    %139 = arith.mulf %136, %138 : vector<32x32xf32>
    %c9 = arith.constant 9 : index
    %c0_47 = arith.constant 0 : index
    %140 = vector.load %arg5[%c9, %c0_47] : memref<16x128xf32, #tpu.memory_space<vmem>>, vector<1x32xf32>
    %141 = vector.broadcast %140 : vector<1x32xf32> to vector<32x32xf32>
    %142 = arith.addf %139, %141 : vector<32x32xf32>
    %c0_48 = arith.constant 0 : index
    %c0_49 = arith.constant 0 : index
    %143 = vector.load %arg2[%c0_48, %c0_49] : memref<6x32xf32, #tpu.memory_space<vmem>>, vector<6x32xf32>
    %cst_50 = arith.constant dense<0.000000e+00> : vector<6x32xf32>
    %144 = tpu.matmul %143, %142, %cst_50 {dimension_numbers = #tpu.dot_dimension_numbers<[1], [0], [0], [1], [0, 0, 1, 1], [], []>} : vector<6x32xf32>, vector<32x32xf32>, vector<6x32xf32> -> vector<6x32xf32>
    %145 = vector.extract_strided_slice %144 {offsets = [0, 0], sizes = [2, 32], strides = [1, 1]} : vector<6x32xf32> to vector<2x32xf32>
    %146 = vector.extract_strided_slice %144 {offsets = [2, 0], sizes = [4, 32], strides = [1, 1]} : vector<6x32xf32> to vector<4x32xf32>
    %147 = arith.truncf %145 : vector<2x32xf32> to vector<2x32xbf16>
    %c160 = arith.constant 160 : index
    %c0_51 = arith.constant 0 : index
    %148 = vector.load %arg4[%c160, %c0_51] : memref<352x128xbf16, #tpu.memory_space<vmem>>, vector<32x32xbf16>
    %cst_52 = arith.constant dense<0.000000e+00> : vector<2x32xf32>
    %149 = tpu.matmul %147, %148, %cst_52 {dimension_numbers = #tpu.dot_dimension_numbers<[1], [0], [0], [1], [0, 0, 1, 1], [], []>} : vector<2x32xbf16>, vector<32x32xbf16>, vector<2x32xf32> -> vector<2x32xf32>
    %c10 = arith.constant 10 : index
    %c0_53 = arith.constant 0 : index
    %150 = vector.load %arg5[%c10, %c0_53] : memref<16x128xf32, #tpu.memory_space<vmem>>, vector<1x32xf32>
    %151 = vector.broadcast %150 : vector<1x32xf32> to vector<2x32xf32>
    %152 = arith.addf %149, %151 : vector<2x32xf32>
    %153 = math.tanh %152 : vector<2x32xf32>
    %154 = arith.truncf %153 : vector<2x32xf32> to vector<2x32xbf16>
    %c192 = arith.constant 192 : index
    %c0_54 = arith.constant 0 : index
    %155 = vector.load %arg4[%c192, %c0_54] : memref<352x128xbf16, #tpu.memory_space<vmem>>, vector<32x32xbf16>
    %cst_55 = arith.constant dense<0.000000e+00> : vector<2x32xf32>
    %156 = tpu.matmul %154, %155, %cst_55 {dimension_numbers = #tpu.dot_dimension_numbers<[1], [0], [0], [1], [0, 0, 1, 1], [], []>} : vector<2x32xbf16>, vector<32x32xbf16>, vector<2x32xf32> -> vector<2x32xf32>
    %c11 = arith.constant 11 : index
    %c0_56 = arith.constant 0 : index
    %157 = vector.load %arg5[%c11, %c0_56] : memref<16x128xf32, #tpu.memory_space<vmem>>, vector<1x32xf32>
    %158 = vector.broadcast %157 : vector<1x32xf32> to vector<2x32xf32>
    %159 = arith.addf %156, %158 : vector<2x32xf32>
    %160 = math.tanh %159 : vector<2x32xf32>
    %161 = arith.truncf %146 : vector<4x32xf32> to vector<4x32xbf16>
    %c224 = arith.constant 224 : index
    %c0_57 = arith.constant 0 : index
    %162 = vector.load %arg4[%c224, %c0_57] : memref<352x128xbf16, #tpu.memory_space<vmem>>, vector<32x32xbf16>
    %cst_58 = arith.constant dense<0.000000e+00> : vector<4x32xf32>
    %163 = tpu.matmul %161, %162, %cst_58 {dimension_numbers = #tpu.dot_dimension_numbers<[1], [0], [0], [1], [0, 0, 1, 1], [], []>} : vector<4x32xbf16>, vector<32x32xbf16>, vector<4x32xf32> -> vector<4x32xf32>
    %c12 = arith.constant 12 : index
    %c0_59 = arith.constant 0 : index
    %164 = vector.load %arg5[%c12, %c0_59] : memref<16x128xf32, #tpu.memory_space<vmem>>, vector<1x32xf32>
    %165 = vector.broadcast %164 : vector<1x32xf32> to vector<4x32xf32>
    %166 = arith.addf %163, %165 : vector<4x32xf32>
    %167 = math.tanh %166 : vector<4x32xf32>
    %168 = vector.extract_strided_slice %167 {offsets = [0, 0], sizes = [2, 32], strides = [1, 1]} : vector<4x32xf32> to vector<2x32xf32>
    %169 = vector.extract_strided_slice %167 {offsets = [2, 0], sizes = [2, 32], strides = [1, 1]} : vector<4x32xf32> to vector<2x32xf32>
    %170 = arith.truncf %160 : vector<2x32xf32> to vector<2x32xbf16>
    %c256 = arith.constant 256 : index
    %c0_60 = arith.constant 0 : index
    %171 = vector.load %arg4[%c256, %c0_60] : memref<352x128xbf16, #tpu.memory_space<vmem>>, vector<32x4xbf16>
    %cst_61 = arith.constant dense<0.000000e+00> : vector<2x4xf32>
    %172 = tpu.matmul %170, %171, %cst_61 {dimension_numbers = #tpu.dot_dimension_numbers<[1], [0], [0], [1], [0, 0, 1, 1], [], []>} : vector<2x32xbf16>, vector<32x4xbf16>, vector<2x4xf32> -> vector<2x4xf32>
    %173 = arith.truncf %168 : vector<2x32xf32> to vector<2x32xbf16>
    %c288 = arith.constant 288 : index
    %c0_62 = arith.constant 0 : index
    %174 = vector.load %arg4[%c288, %c0_62] : memref<352x128xbf16, #tpu.memory_space<vmem>>, vector<32x4xbf16>
    %cst_63 = arith.constant dense<0.000000e+00> : vector<2x4xf32>
    %175 = tpu.matmul %173, %174, %cst_63 {dimension_numbers = #tpu.dot_dimension_numbers<[1], [0], [0], [1], [0, 0, 1, 1], [], []>} : vector<2x32xbf16>, vector<32x4xbf16>, vector<2x4xf32> -> vector<2x4xf32>
    %176 = arith.addf %172, %175 : vector<2x4xf32>
    %177 = arith.truncf %169 : vector<2x32xf32> to vector<2x32xbf16>
    %c320 = arith.constant 320 : index
    %c0_64 = arith.constant 0 : index
    %178 = vector.load %arg4[%c320, %c0_64] : memref<352x128xbf16, #tpu.memory_space<vmem>>, vector<32x4xbf16>
    %cst_65 = arith.constant dense<0.000000e+00> : vector<2x4xf32>
    %179 = tpu.matmul %177, %178, %cst_65 {dimension_numbers = #tpu.dot_dimension_numbers<[1], [0], [0], [1], [0, 0, 1, 1], [], []>} : vector<2x32xbf16>, vector<32x4xbf16>, vector<2x4xf32> -> vector<2x4xf32>
    %180 = arith.addf %176, %179 : vector<2x4xf32>
    %c13 = arith.constant 13 : index
    %c0_66 = arith.constant 0 : index
    %181 = vector.load %arg5[%c13, %c0_66] : memref<16x128xf32, #tpu.memory_space<vmem>>, vector<1x4xf32>
    %182 = vector.broadcast %181 : vector<1x4xf32> to vector<2x4xf32>
    %183 = arith.addf %180, %182 : vector<2x4xf32>
    %cst_67 = arith.constant dense<0xFF800000> : vector<2xf32>
    %184 = vector.multi_reduction <maximumf>, %183, %cst_67 [1] : vector<2x4xf32> to vector<2xf32>
    %185 = vector.shape_cast %184 : vector<2xf32> to vector<2x1xf32>
    %186 = vector.broadcast %185 : vector<2x1xf32> to vector<2x4xf32>
    %187 = arith.subf %183, %186 : vector<2x4xf32>
    %188 = math.exp %187 : vector<2x4xf32>
    %cst_68 = arith.constant dense<0.000000e+00> : vector<2xf32>
    %189 = vector.multi_reduction <add>, %188, %cst_68 [1] : vector<2x4xf32> to vector<2xf32>
    %190 = vector.shape_cast %189 : vector<2xf32> to vector<2x1xf32>
    %191 = math.log %190 : vector<2x1xf32>
    %192 = arith.addf %185, %191 : vector<2x1xf32>
    %c0_69 = arith.constant 0 : index
    %c0_70 = arith.constant 0 : index
    %193 = vector.load %arg3[%c0_69, %c0_70] : memref<2x4xf32, #tpu.memory_space<vmem>>, vector<2x4xf32>
    %194 = vector.broadcast %192 : vector<2x1xf32> to vector<2x4xf32>
    %195 = arith.subf %183, %194 : vector<2x4xf32>
    %196 = arith.mulf %193, %195 : vector<2x4xf32>
    %197 = vector.shape_cast %196 : vector<2x4xf32> to vector<1x2x4xf32>
    %cst_71 = arith.constant dense<0.000000e+00> : vector<1xf32>
    %198 = vector.multi_reduction <add>, %197, %cst_71 [1, 2] : vector<1x2x4xf32> to vector<1xf32>
    %199 = vector.shape_cast %198 : vector<1xf32> to vector<1x1x1xf32>
    %200 = vector.extract %199[0, 0, 0] : f32 from vector<1x1x1xf32>
    %cst_72 = arith.constant 0.000000e+00 : f32
    %201 = arith.subf %cst_72, %200 : f32
    %cst_73 = arith.constant 5.000000e-01 : f32
    %202 = arith.mulf %201, %cst_73 : f32
    %cst_74 = arith.constant 0.000000e+00 : f32
    %203 = vector.broadcast %cst_74 : f32 to vector<8x128xf32>
    %c0_75 = arith.constant 0 : index
    %c0_76 = arith.constant 0 : index
    %204 = vector.load %arg6[%c0_75, %c0_76] : memref<8x128xf32, #tpu.memory_space<vmem>>, vector<8x128xf32>
    tpu.vector_store %arg6[%c0_75, %c0_76], %203 {strides = array<i32>} : memref<8x128xf32, #tpu.memory_space<vmem>>, vector<8x128xf32>,
    %c0_77 = arith.constant 0 : index
    %c0_78 = arith.constant 0 : index
    %205 = vector.load %arg6[%c0_77, %c0_78] : memref<8x128xf32, #tpu.memory_space<vmem>>, vector<2x4xf32>
    tpu.vector_store %arg6[%c0_77, %c0_78], %183 {strides = array<i32>} : memref<8x128xf32, #tpu.memory_space<vmem>>, vector<2x4xf32>,
    %206 = vector.broadcast %202 : f32 to vector<1x4xf32>
    %c2_79 = arith.constant 2 : index
    %c0_80 = arith.constant 0 : index
    %207 = vector.load %arg6[%c2_79, %c0_80] : memref<8x128xf32, #tpu.memory_space<vmem>>, vector<1x4xf32>
    tpu.vector_store %arg6[%c2_79, %c0_80], %206 {strides = array<i32>} : memref<8x128xf32, #tpu.memory_space<vmem>>, vector<1x4xf32>,
    return
  }
}

</mosaic_0001>

<bundles_post_ra>
// kernel: r_bert_forward.1
= control target key start
LH: loop header
LB: loop body
LE: loop exit
PB: predicated region body
PF: predicated region fallthrough
CT: control target
= control target key end

     0   :  { %vm28_vm0 = vcmask 261120   ;;  %v1453_v8 = vmov 32.0   ;;  %s1454_s14 = smov 112   ;;  %s1455_s15 = smov 96   ;;  %vm209_vm14 = vcmask 130048   ;;  %vm307_vm15 = vcmask 523264   ;;  %s1915_s0 = inlined_call_operand.vmem [shape: f32[32,32], index: 0, kind: input, shape index: {}]   ;;  %s1916_s5 = inlined_call_operand.vmem [shape: f32[16,128], index: 5, kind: input, shape index: {}]   ;;  %s1917_s4 = inlined_call_operand.vmem [shape: bf16[352,128], index: 4, kind: input, shape index: {}]   ;;  %s1918_s1 = inlined_call_operand.vmem [shape: f32[64,64], index: 1, kind: input, shape index: {}]   ;;  %s1919_s2 = inlined_call_operand.vmem [shape: f32[6,32], index: 2, kind: input, shape index: {}]   ;;  %s1920_s6 = inlined_call_operand.vmem [shape: f32[8,128], index: 6, kind: output, shape index: {}]   ;;  %s1921_s3 = inlined_call_operand.vmem [shape: f32[2,4], index: 3, kind: input, shape index: {}]  }
   0x1   :  { %v26_v0 = vld [vmem:[%s1915_s0 + $0x10] sm:$0xff]  ;;  %v24_v1 = vld [vmem:[%s1915_s0] sm:$0xff]  ;;  %v27_v4 = vld [vmem:[%s1915_s0 + $0x18] sm:$0xff]  ;;  %1377 = vrcp.f32 %v1453_v8  ;;  %s1456_s26 = smov 64  }
   0x2   :  { %v35_v2 = vsel %vm28_vm0, %v26_v0, 0.0  ;;  %v29_v3 = vsel %vm28_vm0, %v24_v1, 0.0  ;;  %v25_v5 = vld [vmem:[%s1915_s0 + $0x8] sm:$0xff]  ;;  %v38_v6 = vsel %vm28_vm0, %v27_v4, 0.0  ;;  %v1314_v39 = vld [vmem:[%s1917_s4] sm:$0xff] }
   0x3   :  { %36 = vadd.xlane.f32.xlu1 %v35_v2  ;;  %30 = vadd.xlane.f32.xlu0 %v29_v3  ;;  %v32_v7 = vsel %vm28_vm0, %v25_v5, 0.0  ;;  %v1315_v35 = vld [vmem:[%s1917_s4 + $0x8] sm:$0xff] }
   0x4   :  { %168 = vmatpush.bf16.msra.mxu0 %v1315_v35 }
   0x7   :  { %v1378_v9 = vpop.eup %1377 }
   0x8   :  { %v42_v10 = vmul.f32 32.0, %v1378_v9  ;;  %vm46_vm1 = vweird.f32 %v1378_v9  ;;  %169 = vmatpush.bf16.msra.mxu0 %v1314_v39 }
   0xa   :  { %v43_v11 = vsub.f32 1.0, %v42_v10 }
   0xb   :  { %39 = vadd.xlane.f32.xlu1 %v38_v6  ;;  %33 = vadd.xlane.f32.xlu0 %v32_v7 }
   0xc   :  { %v44_v12 = vmul.f32 %v1378_v9, %v43_v11 }
   0xe   :  { %v45_v13 = vadd.f32 %v1378_v9, %v44_v12  ;;  %v1364_v12 = vld [vmem:[%s1916_s5 + $0x1] ss:$0 sm:$0xff] }
  0x10   :  { %v1509_v14 = vsel %vm46_vm1, %v1378_v9, %v45_v13 }
  0x76   :  { %v37_v15 = vpop.xlane.xlu1 %36  ;;  %v31_v16 = vpop.xlane.xlu0 %30 }
  0x77   :  { %v50_v17 = vmul.f32 %v1509_v14, %v37_v15  ;;  %v48_v18 = vmul.f32 %v1509_v14, %v31_v16 }
  0x79   :  { %v1513_v19 = vsub.f32 %v26_v0, %v50_v17  ;;  %v1515_v20 = vsub.f32 %v24_v1, %v48_v18 }
  0x7b   :  { %v58_v21 = vmul.f32 %v1513_v19, %v1513_v19  ;;  %v56_v22 = vmul.f32 %v1515_v20, %v1515_v20 }
  0x7d   :  { %v66_v23 = vsel %vm28_vm0, %v58_v21, 0.0  ;;  %v60_v24 = vsel %vm28_vm0, %v56_v22, 0.0 }
  0x7e   :  { %v40_v25 = vpop.xlane.xlu1 %39  ;;  %67 = vadd.xlane.f32.xlu0 %v66_v23  ;;  %61 = vadd.xlane.f32.xlu2 %v60_v24  ;;  %v34_v26 = vpop.xlane.xlu0 %33 }
  0x7f   :  { %v51_v27 = vmul.f32 %v1509_v14, %v40_v25  ;;  %v49_v28 = vmul.f32 %v1509_v14, %v34_v26 }
  0x81   :  { %v1525_v29 = vsub.f32 %v27_v4, %v51_v27  ;;  %v53_v30 = vsub.f32 %v25_v5, %v49_v28  ;;  %v1363_v5 = vld [vmem:[%s1916_s5] ss:$0 sm:$0xff] }
  0x83   :  { %v59_v31 = vmul.f32 %v1525_v29, %v1525_v29  ;;  %v57_v32 = vmul.f32 %v53_v30, %v53_v30 }
  0x85   :  { %v69_v33 = vsel %vm28_vm0, %v59_v31, 0.0  ;;  %v63_v34 = vsel %vm28_vm0, %v57_v32, 0.0 }
  0x86   :  { %70 = vadd.xlane.f32.xlu1 %v69_v33  ;;  %64 = vadd.xlane.f32.xlu2 %v63_v34  ;;  %v1365_v33 = vld [vmem:[%s1916_s5 + $0x2] ss:$0 sm:$0xff] }
  0xf1   :  { %v62_v36 = vpop.xlane.xlu2 %61  ;;  %v68_v38 = vpop.xlane.xlu0 %67 }
  0xf2   :  { %v72_v37 = vmul.f32 %v62_v36, %v1509_v14  ;;  %v74_v41 = vmul.f32 %v68_v38, %v1509_v14 }
  0xf4   :  { %v76_v40 = vadd.f32 1e-12, %v72_v37  ;;  %v78_v42 = vadd.f32 1e-12, %v74_v41 }
  0xf6   :  { %1379 = vrsqrt.f32 %v76_v40  ;;  %vm86_vm3 = vweird.f32 %v76_v40  ;;  %vm106_vm10 = vweird.f32 %v78_v42 }
  0xf7   :  { %1381 = vrsqrt.f32 %v78_v42 }
  0xf9   :  { %v71_v43 = vpop.xlane.xlu1 %70  ;;  %v65_v44 = vpop.xlane.xlu2 %64 }
  0xfa   :  { %v75_v45 = vmul.f32 %v71_v43, %v1509_v14  ;;  %v73_v46 = vmul.f32 %v65_v44, %v1509_v14 }
  0xfc   :  { %v1380_v47 = vpop.eup %1379  ;;  %v79_v48 = vadd.f32 1e-12, %v75_v45  ;;  %v77_v49 = vadd.f32 1e-12, %v73_v46 }
  0xfd   :  { %v81_v50 = vmul.f32 %v1380_v47, %v76_v40  ;;  %v1382_v53 = vpop.eup %1381  ;;  %vm87_vm2 = vweird.f32 %v1380_v47 }
  0xfe   :  { %1383 = vrsqrt.f32 %v79_v48  ;;  %v101_v59 = vmul.f32 %v1382_v53, %v78_v42  ;;  %vm88_vm4 = vmor %vm86_vm3, %vm87_vm2  ;;  %vm96_vm6 = vweird.f32 %v77_v49  ;;  %vm116_vm8 = vweird.f32 %v79_v48 }
  0xff   :  { %v82_v51 = vmul.f32 %v1380_v47, %v81_v50  ;;  %1385 = vrsqrt.f32 %v77_v49  ;;  %vm107_vm11 = vweird.f32 %v1382_v53 }
 0x100   :  { %v102_v0 = vmul.f32 %v1382_v53, %v101_v59  ;;  %vm108_vm13 = vmor %vm106_vm10, %vm107_vm11 }
 0x101   :  { %v83_v52 = vmul.f32 0.5, %v82_v51 }
 0x102   :  { %v103_v6 = vmul.f32 0.5, %v102_v0 }
 0x103   :  { %v84_v54 = vsub.f32 1.5, %v83_v52  ;;  %v291_v52 = vld [vmem:[%s1918_s1] sm:$0xff] }
 0x104   :  { %v1384_v55 = vpop.eup %1383  ;;  %v104_v13 = vsub.f32 1.5, %v103_v6 }
 0x105   :  { %v1386_v56 = vpop.eup %1385  ;;  %v111_v57 = vmul.f32 %v1384_v55, %v79_v48  ;;  %v85_v58 = vmul.f32 %v1380_v47, %v84_v54  ;;  %vm117_vm9 = vweird.f32 %v1384_v55 }
 0x106   :  { %v91_v60 = vmul.f32 %v1386_v56, %v77_v49  ;;  %vm97_vm5 = vweird.f32 %v1386_v56  ;;  %vm118_vm12 = vmor %vm116_vm8, %vm117_vm9 }
 0x107   :  { %v112_v61 = vmul.f32 %v1384_v55, %v111_v57  ;;  %v89_v63 = vsel %vm88_vm4, %v1380_v47, %v85_v58  ;;  %vm98_vm7 = vmor %vm96_vm6, %vm97_vm5  ;;  %v292_v57 = vld [vmem:[%s1918_s1 + $0x8] sm:$0xff] }
 0x108   :  { %v92_v62 = vmul.f32 %v1386_v56, %v91_v60  ;;  %v120_v4 = vmul.f32 %v89_v63, %v1515_v20  ;;  %v105_v20 = vmul.f32 %v1382_v53, %v104_v13 }
 0x109   :  { %v113_v2 = vmul.f32 0.5, %v112_v61 }
 0x10a   :  { %v93_v1 = vmul.f32 0.5, %v92_v62  ;;  %v126_v11 = vmul.f32 %v1363_v5, %v120_v4  ;;  %v109_v23 = vsel %vm108_vm13, %v1382_v53, %v105_v20  ;;  %v293_v62 = vld [vmem:[%s1918_s1 + $0x10] sm:$0xff] }
 0x10b   :  { %v114_v8 = vsub.f32 1.5, %v113_v2  ;;  %v122_v25 = vmul.f32 %v109_v23, %v1513_v19 }
 0x10c   :  { %v94_v3 = vsub.f32 1.5, %v93_v1  ;;  %v1548_v17 = vadd.f32 %v1364_v12, %v126_v11 }
 0x10d   :  { %v115_v16 = vmul.f32 %v1384_v55, %v114_v8  ;;  %v128_v27 = vmul.f32 %v1363_v5, %v122_v25  ;;  %v295_v8 = vld [vmem:[%s1918_s1 + $0x20] sm:$0xff]  ;;  %v296_v25 = vld [vmem:[%s1918_s1 + $0x28] sm:$0xff] }
 0x10e   :  { %v95_v7 = vmul.f32 %v1386_v56, %v94_v3  ;;  %v294_v3 = vld [vmem:[%s1918_s1 + $0x18] sm:$0xff] }
 0x10f   :  { %v119_v22 = vsel %vm118_vm12, %v1384_v55, %v115_v16  ;;  %v297_v16 = vld [vmem:[%s1918_s1 + $0x30] sm:$0xff] }
 0x110   :  { %v99_v9 = vsel %vm98_vm7, %v1386_v56, %v95_v7  ;;  %v123_v24 = vmul.f32 %v119_v22, %v1525_v29 }
 0x111   :  { %v121_v10 = vmul.f32 %v99_v9, %v53_v30  ;;  %v1559_v30 = vadd.f32 %v1364_v12, %v128_v27 }
 0x112   :  { %v129_v26 = vmul.f32 %v1363_v5, %v123_v24 }
 0x113   :  { %v127_v15 = vmul.f32 %v1363_v5, %v121_v10 }
 0x114   :  { %v1557_v28 = vadd.f32 %v1364_v12, %v129_v26 }
 0x115   :  { %v1550_v18 = vadd.f32 %v1364_v12, %v127_v15 }
 0x116   :  { %v137_v31 = vpack.c.bf16 %v1557_v28, %v1559_v30 }
 0x117   :  { %v136_v21 = vpack.c.bf16 %v1550_v18, %v1548_v17 }
 0x119   :  { %1193 = vmatmul.msk.bf16.vlgmr.msra.gmra.mxu0 %vm28_vm0, %v136_v21 }
 0x129   :  { %1194 = vmatmul.msk.bf16.gmra.mxu0 %vm28_vm0, %v137_v31 }
 0x196   :  { %v171_v32 = vpop.f32.mrf.mxu0 }
 0x197   :  { %v1576_v38 = vadd.f32 %v1365_v33, %v171_v32 }
 0x19e   :  { %v173_v34 = vpop.f32.mrf.mxu0 }
 0x19f   :  { %v1567_v29 = vadd.f32 %v1365_v33, %v173_v34 }
 0x1a1   :  { %187 = vrot.lane.b32.xlu1 %v1567_v29, %s1454_s14 }
 0x1a6   :  { %v176_v19 = vpop.f32.mrf.mxu0 }
 0x1a7   :  { %v1570_v35 = vadd.f32 %v1365_v33, %v176_v19 }
 0x1a9   :  { %189 = vrot.lane.b32.xlu0 %v1570_v35, %s1454_s14 }
 0x1ae   :  { %v178_v36 = vpop.f32.mrf.mxu0 }
 0x1af   :  { %v1573_v37 = vadd.f32 %v1365_v33, %v178_v36  ;;  %v298_v33 = vld [vmem:[%s1918_s1 + $0x38] sm:$0xff]  ;;  %v1358_v36 = vpack.i.bf16 %v1576_v38, %v1567_v29 }
 0x1b1   :  { %191 = vrot.lane.b32.xlu2 %v1573_v37, %s1454_s14 }
 0x1b9   :  { %185 = vrot.lane.b32.xlu2 %v1576_v38, %s1454_s14 }
 0x20b   :  { %v1579_v39 = vpop.permute.xlu2 %191 }
 0x20c   :  { %207 = vrot.lane.b32.xlu0 %v1579_v39, %s1455_s15 }
 0x213   :  { %v1582_v40 = vpop.permute.xlu1 %187  ;;  %v1584_v41 = vpop.permute.xlu2 %185 }
 0x214   :  { %203 = vrot.lane.b32.xlu1 %v1582_v40, %s1455_s15  ;;  %201 = vrot.lane.b32.xlu0 %v1584_v41, %s1455_s15  ;;  %v1348_v13 = vpack.i.bf16 %v1584_v41, %v1582_v40 }
 0x21b   :  { %v1588_v42 = vpop.permute.xlu0 %189 }
 0x21c   :  { %197 = vrot.lane.b32.xlu1 %v1570_v35, %s1455_s15  ;;  %195 = vrot.lane.b32.xlu0 %v1567_v29, %s1455_s15  ;;  %v1343_v22 = vpack.i.bf16 %v1588_v42, %v1579_v39 }
 0x21d   :  { %205 = vrot.lane.b32.xlu2 %v1588_v42, %s1455_s15 }
 0x225   :  { %199 = vrot.lane.b32.xlu2 %v1573_v37, %s1455_s15 }
 0x22d   :  { %193 = vrot.lane.b32.xlu2 %v1576_v38, %s1455_s15 }
 0x277   :  { %v206_v44 = vpop.permute.xlu2 %205 }
 0x27e   :  { %v208_v43 = vpop.permute.xlu0 %207 }
 0x27f   :  { %1195 = vmatpush.xpose.msk.msra.mxu1 %vm209_vm14, %v208_v43  ;;  %v200_v47 = vpop.permute.xlu2 %199 }
 0x283   :  { %1196 = vmatpush.xpose.msk.msra.mxu1 %vm209_vm14, %v206_v44 }
 0x286   :  { %v204_v45 = vpop.permute.xlu1 %203  ;;  %v202_v46 = vpop.permute.xlu0 %201 }
 0x287   :  { %1197 = vmatpush.xpose.msk.msra.mxu1 %vm209_vm14, %v204_v45  ;;  %v194_v50 = vpop.permute.xlu2 %193 }
 0x28b   :  { %1198 = vmatpush.xpose.msk.msra.mxu1 %vm209_vm14, %v202_v46 }
 0x28e   :  { %v198_v48 = vpop.permute.xlu1 %197  ;;  %v196_v49 = vpop.permute.xlu0 %195 }
 0x28f   :  { %1199 = vmatpush.xpose.msk.msra.mxu1 %vm209_vm14, %v200_v47 }
 0x293   :  { %1200 = vmatpush.xpose.msk.msra.mxu1 %vm209_vm14, %v198_v48 }
 0x297   :  { %1201 = vmatpush.xpose.msk.msra.mxu1 %vm209_vm14, %v196_v49 }
 0x29b   :  { %1202 = vmatpush.xpose.msk.msra.mxu1 %vm209_vm14, %v194_v50  ;;  %v1353_v50 = vpack.i.bf16 %v1570_v35, %v1573_v37 }
 0x29e   :  { %1203 = vmatmul.msk.f32.vlgmr.msra.gmra.mxu1 %vm209_vm14, %v1576_v38 }
 0x2a6   :  { %1204 = vmatmul.msk.f32.gmra.mxu1 %vm209_vm14, %v1567_v29 }
 0x2ae   :  { %1205 = vmatmul.msk.f32.gmra.mxu1 %vm209_vm14, %v1570_v35 }
 0x2b6   :  { %1206 = vmatmul.msk.f32.gmra.mxu1 %vm209_vm14, %v1573_v37 }
 0x2be   :  { %1207 = vmatmul.msk.f32.gmra.mxu1 %vm209_vm14, %v1584_v41 }
 0x2c6   :  { %1208 = vmatmul.msk.f32.gmra.mxu1 %vm209_vm14, %v1582_v40 }
 0x2ce   :  { %1209 = vmatmul.msk.f32.gmra.mxu1 %vm209_vm14, %v1588_v42 }
 0x2d6   :  { %1210 = vmatmul.msk.f32.gmra.mxu1 %vm209_vm14, %v1579_v39 }
 0x31b   :  { %v259_v51 = vpop.f32.mrf.mxu1 }
 0x31c   :  { %v283_v53 = vmul.f32 0.25, %v259_v51 }
 0x31e   :  { %v299_v54 = vadd.f32 %v291_v52, %v283_v53 }
 0x320   :  { %v308_v55 = vsel %vm307_vm15, %v299_v54, -inf }
 0x321   :  { %309 = vmax.xlane.f32.xlu1 %v308_v55 }
 0x323   :  { %v262_v56 = vpop.f32.mrf.mxu1 }
 0x324   :  { %v284_v58 = vmul.f32 0.25, %v262_v56 }
 0x326   :  { %v300_v59 = vadd.f32 %v292_v57, %v284_v58 }
 0x328   :  { %v311_v60 = vsel %vm307_vm15, %v300_v59, -inf }
 0x329   :  { %312 = vmax.xlane.f32.xlu0 %v311_v60 }
 0x32b   :  { %v265_v61 = vpop.f32.mrf.mxu1 }
 0x32c   :  { %v285_v63 = vmul.f32 0.25, %v265_v61 }
 0x32e   :  { %v1630_v0 = vadd.f32 %v293_v62, %v285_v63 }
 0x330   :  { %v314_v1 = vsel %vm307_vm15, %v1630_v0, -inf }
 0x331   :  { %315 = vmax.xlane.f32.xlu2 %v314_v1 }
 0x333   :  { %v268_v2 = vpop.f32.mrf.mxu1 }
 0x334   :  { %v286_v4 = vmul.f32 0.25, %v268_v2 }
 0x336   :  { %v302_v5 = vadd.f32 %v294_v3, %v286_v4 }
 0x338   :  { %v317_v6 = vsel %vm307_vm15, %v302_v5, -inf }
 0x339   :  { %318 = vmax.xlane.f32.xlu1 %v317_v6 }
 0x33b   :  { %v271_v7 = vpop.f32.mrf.mxu1 }
 0x33c   :  { %v287_v9 = vmul.f32 0.25, %v271_v7 }
 0x33e   :  { %v303_v10 = vadd.f32 %v295_v8, %v287_v9 }
 0x340   :  { %v320_v11 = vsel %vm307_vm15, %v303_v10, -inf }
 0x341   :  { %321 = vmax.xlane.f32.xlu0 %v320_v11 }
 0x343   :  { %v274_v12 = vpop.f32.mrf.mxu1 }
 0x344   :  { %v288_v24 = vmul.f32 0.25, %v274_v12 }
 0x346   :  { %v1658_v26 = vadd.f32 %v296_v25, %v288_v24 }
 0x348   :  { %v323_v31 = vsel %vm307_vm15, %v1658_v26, -inf }
 0x349   :  { %1349 = vrot.lane.b32.xlu2 %v1348_v13, %s1456_s26 }
 0x34b   :  { %v277_v15 = vpop.f32.mrf.mxu1 }
 0x34c   :  { %v289_v20 = vmul.f32 0.25, %v277_v15 }
 0x34e   :  { %v1648_v21 = vadd.f32 %v297_v16, %v289_v20 }
 0x350   :  { %v326_v23 = vsel %vm307_vm15, %v1648_v21, -inf }
 0x351   :  { %327 = vmax.xlane.f32.xlu0 %v326_v23 }
 0x352   :  { %1344 = vrot.lane.b32.xlu1 %v1343_v22, %s1456_s26 }
 0x353   :  { %v280_v27 = vpop.f32.mrf.mxu1 }
 0x354   :  { %v290_v32 = vmul.f32 0.25, %v280_v27 }
 0x356   :  { %v1665_v34 = vadd.f32 %v298_v33, %v290_v32 }
 0x358   :  { %v329_v19 = vsel %vm307_vm15, %v1665_v34, -inf }
 0x372   :  { %324 = vmax.xlane.f32.xlu2 %v323_v31 }
 0x37c   :  { %330 = vmax.xlane.f32.xlu1 %v329_v19 }
 0x38a   :  { %1359 = vrot.lane.b32.xlu2 %v1358_v36, %s1456_s26 }
 0x394   :  { %v310_v39 = vpop.xlane.xlu1 %309 }
 0x395   :  { %v332_v40 = vsub.f32 %v299_v54, %v310_v39 }
 0x397   :  { %v340_v41 = vmul.f32 1.442695, %v332_v40 }
 0x399   :  { %1387 = vpow2.f32 %v340_v41 }
 0x39c   :  { %v313_v42 = vpop.xlane.xlu0 %312 }
 0x39d   :  { %v333_v45 = vsub.f32 %v300_v59, %v313_v42 }
 0x39f   :  { %v1672_v43 = vpop.eup %1387  ;;  %v342_v46 = vmul.f32 1.442695, %v333_v45 }
 0x3a0   :  { %v356_v44 = vsel %vm307_vm15, %v1672_v43, 0.0 }
 0x3a1   :  { %357 = vadd.xlane.f32.xlu0 %v356_v44  ;;  %1389 = vpow2.f32 %v342_v46 }
 0x3a4   :  { %v316_v56 = vpop.xlane.xlu2 %315 }
 0x3a5   :  { %v334_v63 = vsub.f32 %v1630_v0, %v316_v56 }
 0x3a7   :  { %v1676_v49 = vpop.eup %1389  ;;  %v344_v1 = vmul.f32 1.442695, %v334_v63 }
 0x3a8   :  { %v359_v38 = vsel %vm307_vm15, %v1676_v49, 0.0 }
 0x3ac   :  { %v319_v47 = vpop.xlane.xlu1 %318  ;;  %v1350_v59 = vpop.permute.xlu2 %1349 }
 0x3ad   :  { %v335_v48 = vsub.f32 %v302_v5, %v319_v47  ;;  %v1351_v61 = vunpack.i.l.bf16 %v1350_v59  ;;  %v1352_v62 = vunpack.i.h.bf16 %v1350_v59 }
 0x3af   :  { %v346_v29 = vmul.f32 1.442695, %v335_v48 }
 0x3b1   :  { %1391 = vpow2.f32 %v346_v29 }
 0x3b3   :  { %360 = vadd.xlane.f32.xlu2 %v359_v38 }
 0x3b4   :  { %v322_v51 = vpop.xlane.xlu0 %321 }
 0x3b5   :  { %v336_v52 = vsub.f32 %v303_v10, %v322_v51  ;;  %1354 = vrot.lane.b32.xlu0 %v1353_v50, %s1456_s26 }
 0x3b7   :  { %v1683_v53 = vpop.eup %1391  ;;  %v348_v54 = vmul.f32 1.442695, %v336_v52 }
 0x3b8   :  { %v365_v55 = vsel %vm307_vm15, %v1683_v53, 0.0 }
 0x3b9   :  { %1393 = vpow2.f32 %v348_v54  ;;  %366 = vadd.xlane.f32.xlu1 %v365_v55 }
 0x3ba   :  { %1395 = vpow2.f32 %v344_v1 }
 0x3bf   :  { %v1687_v57 = vpop.eup %1393 }
 0x3c0   :  { %v368_v58 = vsel %vm307_vm15, %v1687_v57, 0.0  ;;  %v1396_v5 = vpop.eup %1395 }
 0x3c1   :  { %369 = vadd.xlane.f32.xlu1 %v368_v58  ;;  %v362_v6 = vsel %vm307_vm15, %v1396_v5, 0.0  ;;  %v1317_v58 = vld [vmem:[%s1917_s4 + $0x18] sm:$0xff] }
 0x3c2   :  { %512 = vmatpush.bf16.msra.mxu3 %v1317_v58 }
 0x3c4   :  { %v1345_v35 = vpop.permute.xlu1 %1344  ;;  %v328_v2 = vpop.xlane.xlu0 %327 }
 0x3c5   :  { %v1346_v37 = vunpack.i.l.bf16 %v1345_v35  ;;  %v1347_v60 = vunpack.i.h.bf16 %v1345_v35  ;;  %v338_v3 = vsub.f32 %v1648_v21, %v328_v2 }
 0x3c7   :  { %452 = vmatpush.msra.mxu2 %v1346_v37  ;;  %v352_v4 = vmul.f32 1.442695, %v338_v3 }
 0x3c9   :  { %453 = vmatpush.msra.mxu2 %v1347_v60  ;;  %1397 = vpow2.f32 %v352_v4  ;;  %v1316_v60 = vld [vmem:[%s1917_s4 + $0x10] sm:$0xff] }
 0x3ca   :  { %543 = vmatpush.bf16.msrb.mxu3 %v1316_v60 }
 0x3cb   :  { %454 = vmatpush.msra.mxu2 %v1351_v61 }
 0x3cd   :  { %455 = vmatpush.msra.mxu2 %v1352_v62 }
 0x3cf   :  { %v1398_v7 = vpop.eup %1397 }
 0x3d0   :  { %v374_v10 = vsel %vm307_vm15, %v1398_v7, 0.0 }
 0x3df   :  { %363 = vadd.xlane.f32.xlu0 %v362_v6 }
 0x3e5   :  { %v325_v8 = vpop.xlane.xlu2 %324 }
 0x3e6   :  { %v337_v9 = vsub.f32 %v1658_v26, %v325_v8  ;;  %v1366_v8 = vld [vmem:[%s1916_s5 + $0x3] ss:$0 sm:$0xff] }
 0x3e7   :  { %375 = vadd.xlane.f32.xlu0 %v374_v10 }
 0x3e8   :  { %v350_v0 = vmul.f32 1.442695, %v337_v9 }
 0x3ea   :  { %1399 = vpow2.f32 %v350_v0 }
 0x3ed   :  { %v1360_v23 = vpop.permute.xlu2 %1359 }
 0x3ee   :  { %v1361_v32 = vunpack.i.l.bf16 %v1360_v23  ;;  %v1362_v33 = vunpack.i.h.bf16 %v1360_v23 }
 0x3ef   :  { %v331_v11 = vpop.xlane.xlu1 %330 }
 0x3f0   :  { %v1400_v12 = vpop.eup %1399  ;;  %v339_v13 = vsub.f32 %v1665_v34, %v331_v11 }
 0x3f1   :  { %v371_v15 = vsel %vm307_vm15, %v1400_v12, 0.0 }
 0x3f2   :  { %v354_v16 = vmul.f32 1.442695, %v339_v13  ;;  %372 = vadd.xlane.f32.xlu2 %v371_v15 }
 0x3f4   :  { %1401 = vpow2.f32 %v354_v16 }
 0x3fa   :  { %v1402_v20 = vpop.eup %1401 }
 0x3fb   :  { %v377_v21 = vsel %vm307_vm15, %v1402_v20, 0.0 }
 0x3fc   :  { %378 = vadd.xlane.f32.xlu1 %v377_v21 }
 0x414   :  { %v358_v22 = vpop.xlane.xlu0 %357 }
 0x415   :  { %1403 = vrcp.f32 %v358_v22 }
 0x41b   :  { %v1404_v31 = vpop.eup %1403 }
 0x41c   :  { %v388_v34 = vmul.f32 %v1404_v31, %v1672_v43 }
 0x426   :  { %v361_v27 = vpop.xlane.xlu2 %360 }
 0x427   :  { %v1355_v24 = vpop.permute.xlu0 %1354  ;;  %1405 = vrcp.f32 %v361_v27 }
 0x428   :  { %v1356_v25 = vunpack.i.l.bf16 %v1355_v24  ;;  %v1357_v26 = vunpack.i.h.bf16 %v1355_v24 }
 0x42a   :  { %456 = vmatpush.msra.mxu2 %v1356_v25 }
 0x42c   :  { %457 = vmatpush.msra.mxu2 %v1357_v26  ;;  %v367_v40 = vpop.xlane.xlu1 %366 }
 0x42d   :  { %v1406_v19 = vpop.eup %1405 }
 0x42e   :  { %458 = vmatpush.msra.mxu2 %v1361_v32  ;;  %v389_v36 = vmul.f32 %v1406_v19, %v1676_v49 }
 0x430   :  { %459 = vmatpush.msra.mxu2 %v1362_v33 }
 0x431   :  { %1211 = vmatmul.msk.f32.vlgmr.msra.gmra.mxu2 %vm307_vm15, %v388_v34 }
 0x434   :  { %v370_v44 = vpop.xlane.xlu1 %369 }
 0x439   :  { %1212 = vmatmul.msk.f32.gmra.mxu2 %vm307_vm15, %v389_v36 }
 0x452   :  { %v364_v39 = vpop.xlane.xlu0 %363 }
 0x453   :  { %1407 = vrcp.f32 %v364_v39 }
 0x454   :  { %1409 = vrcp.f32 %v367_v40 }
 0x455   :  { %1411 = vrcp.f32 %v370_v44 }
 0x459   :  { %v1408_v41 = vpop.eup %1407 }
 0x45a   :  { %v390_v42 = vmul.f32 %v1408_v41, %v1396_v5  ;;  %v1410_v45 = vpop.eup %1409  ;;  %v376_v49 = vpop.xlane.xlu0 %375 }
 0x45b   :  { %v391_v43 = vmul.f32 %v1410_v45, %v1683_v53  ;;  %v1412_v47 = vpop.eup %1411 }
 0x45c   :  { %1213 = vmatmul.msk.f32.gmra.mxu2 %vm307_vm15, %v390_v42  ;;  %v392_v48 = vmul.f32 %v1412_v47, %v1687_v57 }
 0x464   :  { %1214 = vmatmul.msk.f32.gmra.mxu2 %vm307_vm15, %v391_v43 }
 0x465   :  { %v373_v46 = vpop.xlane.xlu2 %372 }
 0x466   :  { %1413 = vrcp.f32 %v373_v46 }
 0x467   :  { %1415 = vrcp.f32 %v376_v49 }
 0x46c   :  { %1215 = vmatmul.msk.f32.gmra.mxu2 %vm307_vm15, %v392_v48  ;;  %v1414_v29 = vpop.eup %1413 }
 0x46d   :  { %v393_v38 = vmul.f32 %v1414_v29, %v1400_v12  ;;  %v1416_v51 = vpop.eup %1415 }
 0x46e   :  { %v394_v52 = vmul.f32 %v1416_v51, %v1398_v7  ;;  %v1319_v51 = vld [vmem:[%s1917_s4 + $0x28] sm:$0xff] }
 0x46f   :  { %v379_v50 = vpop.xlane.xlu1 %378  ;;  %697 = vmatpush.bf16.msrb.mxu0 %v1319_v51  ;;  %v1320_v51 = vld [vmem:[%s1917_s4 + $0x30] sm:$0xff] }
 0x470   :  { %1417 = vrcp.f32 %v379_v50 }
 0x474   :  { %1216 = vmatmul.msk.f32.gmra.mxu2 %vm307_vm15, %v393_v38 }
 0x476   :  { %v1418_v53 = vpop.eup %1417 }
 0x477   :  { %v395_v54 = vmul.f32 %v1418_v53, %v1402_v20 }
 0x47c   :  { %1217 = vmatmul.msk.f32.gmra.mxu2 %vm307_vm15, %v394_v52 }
 0x484   :  { %1218 = vmatmul.msk.f32.gmra.mxu2 %vm307_vm15, %v395_v54 }
 0x4b4   :  { %v461_v55 = vpop.f32.mrf.mxu2 }
 0x4bc   :  { %v464_v56 = vpop.f32.mrf.mxu2 }
 0x4bd   :  { %v485_v57 = vpack.c.bf16 %v464_v56, %v461_v55  ;;  %v1318_v55 = vld [vmem:[%s1917_s4 + $0x20] sm:$0xff] }
 0x4be   :  { %698 = vmatpush.bf16.msrb.mxu0 %v1318_v55 }
 0x4df   :  { %v467_v35 = vpop.f32.mrf.mxu2 }
 0x4e7   :  { %v470_v37 = vpop.f32.mrf.mxu2 }
 0x4e8   :  { %v486_v59 = vpack.c.bf16 %v470_v37, %v467_v35 }
 0x4ef   :  { %v473_v61 = vpop.f32.mrf.mxu2 }
 0x4f7   :  { %v476_v62 = vpop.f32.mrf.mxu2 }
 0x4f8   :  { %v489_v63 = vpack.c.bf16 %v476_v62, %v473_v61 }
 0x4fa   :  { %1223 = vmatmul.msk.bf16.vlgmr.msra.gmra.mxu3 %vm209_vm14, %v489_v63 }
 0x4ff   :  { %v479_v1 = vpop.f32.mrf.mxu2 }
 0x507   :  { %v482_v2 = vpop.f32.mrf.mxu2 }
 0x508   :  { %v490_v3 = vpack.c.bf16 %v482_v2, %v479_v1 }
 0x50a   :  { %1224 = vmatmul.msk.bf16.gmra.mxu3 %vm209_vm14, %v490_v3 }
 0x51a   :  { %1229 = vmatmul.msk.bf16.vlgmr.msrb.gmra.mxu3 %vm209_vm14, %v485_v57 }
 0x52a   :  { %1230 = vmatmul.msk.bf16.gmra.mxu3 %vm209_vm14, %v486_v59 }
 0x57d   :  { %v514_v4 = vpop.f32.mrf.mxu3 }
 0x585   :  { %v516_v5 = vpop.f32.mrf.mxu3 }
 0x58d   :  { %v519_v6 = vpop.f32.mrf.mxu3 }
 0x595   :  { %v521_v7 = vpop.f32.mrf.mxu3 }
 0x59d   :  { %v545_v9 = vpop.f32.mrf.mxu3 }
 0x59e   :  { %v546_v10 = vadd.f32 %v545_v9, %v514_v4 }
 0x5a0   :  { %v557_v0 = vadd.f32 %v1366_v8, %v546_v10 }
 0x5a2   :  { %v561_v11 = vadd.f32 %v557_v0, %v1548_v17 }
 0x5a4   :  { %v565_v12 = vsel %vm28_vm0, %v561_v11, 0.0 }
 0x5a5   :  { %v547_v13 = vpop.f32.mrf.mxu3  ;;  %566 = vadd.xlane.f32.xlu2 %v565_v12 }
 0x5a6   :  { %v548_v15 = vadd.f32 %v547_v13, %v516_v5  ;;  %v1367_v13 = vld [vmem:[%s1916_s5 + $0x4] ss:$0 sm:$0xff] }
 0x5a8   :  { %v558_v16 = vadd.f32 %v1366_v8, %v548_v15 }
 0x5aa   :  { %v562_v20 = vadd.f32 %v558_v16, %v1550_v18 }
 0x5ac   :  { %v568_v21 = vsel %vm28_vm0, %v562_v20, 0.0 }
 0x5ad   :  { %v550_v22 = vpop.f32.mrf.mxu3  ;;  %569 = vadd.xlane.f32.xlu0 %v568_v21 }
 0x5ae   :  { %v551_v23 = vadd.f32 %v550_v22, %v519_v6 }
 0x5b0   :  { %v559_v24 = vadd.f32 %v1366_v8, %v551_v23 }
 0x5b2   :  { %v563_v25 = vadd.f32 %v559_v24, %v1559_v30  ;;  %v1368_v24 = vld [vmem:[%s1916_s5 + $0x5] ss:$0 sm:$0xff] }
 0x5b4   :  { %v571_v26 = vsel %vm28_vm0, %v563_v25, 0.0 }
 0x5b5   :  { %v552_v27 = vpop.f32.mrf.mxu3  ;;  %572 = vadd.xlane.f32.xlu1 %v571_v26 }
 0x5b6   :  { %v553_v17 = vadd.f32 %v552_v27, %v521_v7 }
 0x5b8   :  { %v560_v31 = vadd.f32 %v1366_v8, %v553_v17 }
 0x5ba   :  { %v564_v32 = vadd.f32 %v560_v31, %v1557_v28 }
 0x5bc   :  { %v574_v33 = vsel %vm28_vm0, %v564_v32, 0.0 }
 0x5bd   :  { %575 = vadd.xlane.f32.xlu2 %v574_v33 }
 0x618   :  { %v567_v18 = vpop.xlane.xlu2 %566 }
 0x619   :  { %v577_v34 = vmul.f32 %v567_v18, %v1509_v14 }
 0x61b   :  { %v581_v19 = vsub.f32 %v561_v11, %v577_v34 }
 0x61d   :  { %v585_v36 = vmul.f32 %v581_v19, %v581_v19 }
 0x61f   :  { %v589_v39 = vsel %vm28_vm0, %v585_v36, 0.0 }
 0x620   :  { %v570_v40 = vpop.xlane.xlu0 %569  ;;  %590 = vadd.xlane.f32.xlu0 %v589_v39 }
 0x621   :  { %v578_v30 = vmul.f32 %v570_v40, %v1509_v14 }
 0x623   :  { %v582_v41 = vsub.f32 %v562_v20, %v578_v30 }
 0x625   :  { %v586_v42 = vmul.f32 %v582_v41, %v582_v41 }
 0x627   :  { %v592_v44 = vsel %vm28_vm0, %v586_v42, 0.0 }
 0x628   :  { %v573_v45 = vpop.xlane.xlu1 %572  ;;  %593 = vadd.xlane.f32.xlu1 %v592_v44 }
 0x629   :  { %v579_v28 = vmul.f32 %v573_v45, %v1509_v14 }
 0x62b   :  { %v1737_v43 = vsub.f32 %v563_v25, %v579_v28 }
 0x62d   :  { %v587_v46 = vmul.f32 %v1737_v43, %v1737_v43 }
 0x62f   :  { %v595_v47 = vsel %vm28_vm0, %v587_v46, 0.0 }
 0x630   :  { %596 = vadd.xlane.f32.xlu2 %v595_v47  ;;  %v576_v48 = vpop.xlane.xlu2 %575 }
 0x631   :  { %v580_v49 = vmul.f32 %v576_v48, %v1509_v14 }
 0x633   :  { %v1743_v29 = vsub.f32 %v564_v32, %v580_v49  ;;  %v1322_v49 = vld [vmem:[%s1917_s4 + $0x40] sm:$0xff] }
 0x635   :  { %v588_v38 = vmul.f32 %v1743_v29, %v1743_v29 }
 0x637   :  { %v598_v50 = vsel %vm28_vm0, %v588_v38, 0.0  ;;  %v1369_v38 = vld [vmem:[%s1916_s5 + $0x6] ss:$0 sm:$0xff] }
 0x638   :  { %599 = vadd.xlane.f32.xlu0 %v598_v50 }
 0x693   :  { %v591_v52 = vpop.xlane.xlu0 %590 }
 0x694   :  { %v601_v53 = vmul.f32 %v591_v52, %v1509_v14 }
 0x696   :  { %v605_v54 = vadd.f32 1e-12, %v601_v53 }
 0x698   :  { %1419 = vrsqrt.f32 %v605_v54  ;;  %vm615_vm2 = vweird.f32 %v605_v54 }
 0x69b   :  { %v594_v56 = vpop.xlane.xlu1 %593 }
 0x69c   :  { %v602_v57 = vmul.f32 %v594_v56, %v1509_v14 }
 0x69e   :  { %v1420_v58 = vpop.eup %1419  ;;  %v606_v35 = vadd.f32 1e-12, %v602_v57 }
 0x69f   :  { %v610_v37 = vmul.f32 %v1420_v58, %v605_v54  ;;  %vm616_vm1 = vweird.f32 %v1420_v58 }
 0x6a0   :  { %1421 = vrsqrt.f32 %v606_v35  ;;  %vm617_vm3 = vmor %vm615_vm2, %vm616_vm1  ;;  %vm625_vm5 = vweird.f32 %v606_v35 }
 0x6a1   :  { %v611_v59 = vmul.f32 %v1420_v58, %v610_v37 }
 0x6a3   :  { %v612_v60 = vmul.f32 0.5, %v611_v59  ;;  %v597_v61 = vpop.xlane.xlu2 %596 }
 0x6a4   :  { %v603_v62 = vmul.f32 %v597_v61, %v1509_v14 }
 0x6a5   :  { %v613_v63 = vsub.f32 1.5, %v612_v60 }
 0x6a6   :  { %v1422_v1 = vpop.eup %1421  ;;  %v607_v2 = vadd.f32 1e-12, %v603_v62 }
 0x6a7   :  { %v614_v3 = vmul.f32 %v1420_v58, %v613_v63  ;;  %v620_v4 = vmul.f32 %v1422_v1, %v606_v35  ;;  %vm626_vm4 = vweird.f32 %v1422_v1 }
 0x6a8   :  { %1423 = vrsqrt.f32 %v607_v2  ;;  %vm627_vm6 = vmor %vm625_vm5, %vm626_vm4  ;;  %vm635_vm8 = vweird.f32 %v607_v2 }
 0x6a9   :  { %v621_v5 = vmul.f32 %v1422_v1, %v620_v4  ;;  %v618_v6 = vsel %vm617_vm3, %v1420_v58, %v614_v3 }
 0x6aa   :  { %v649_v11 = vmul.f32 %v618_v6, %v581_v19 }
 0x6ab   :  { %v622_v7 = vmul.f32 0.5, %v621_v5  ;;  %v600_v8 = vpop.xlane.xlu0 %599 }
 0x6ac   :  { %v604_v9 = vmul.f32 %v600_v8, %v1509_v14  ;;  %v655_v23 = vmul.f32 %v1367_v13, %v649_v11 }
 0x6ad   :  { %v623_v10 = vsub.f32 1.5, %v622_v7 }
 0x6ae   :  { %v1424_v0 = vpop.eup %1423  ;;  %v608_v12 = vadd.f32 1e-12, %v604_v9  ;;  %v1764_v31 = vadd.f32 %v1368_v24, %v655_v23 }
 0x6af   :  { %v624_v15 = vmul.f32 %v1422_v1, %v623_v10  ;;  %v630_v16 = vmul.f32 %v1424_v0, %v607_v2  ;;  %vm636_vm7 = vweird.f32 %v1424_v0 }
 0x6b0   :  { %1425 = vrsqrt.f32 %v608_v12  ;;  %vm637_vm9 = vmor %vm635_vm8, %vm636_vm7  ;;  %vm645_vm11 = vweird.f32 %v608_v12 }
 0x6b1   :  { %v628_v20 = vsel %vm627_vm6, %v1422_v1, %v624_v15  ;;  %v631_v21 = vmul.f32 %v1424_v0, %v630_v16 }
 0x6b2   :  { %v650_v22 = vmul.f32 %v628_v20, %v582_v41 }
 0x6b3   :  { %v632_v25 = vmul.f32 0.5, %v631_v21 }
 0x6b4   :  { %v656_v26 = vmul.f32 %v1367_v13, %v650_v22 }
 0x6b5   :  { %v633_v27 = vsub.f32 1.5, %v632_v25 }
 0x6b6   :  { %v1426_v17 = vpop.eup %1425  ;;  %v1766_v32 = vadd.f32 %v1368_v24, %v656_v26 }
 0x6b7   :  { %v634_v33 = vmul.f32 %v1424_v0, %v633_v27  ;;  %v640_v18 = vmul.f32 %v1426_v17, %v608_v12  ;;  %vm646_vm10 = vweird.f32 %v1426_v17 }
 0x6b8   :  { %v665_v34 = vpack.c.bf16 %v1766_v32, %v1764_v31  ;;  %vm647_vm12 = vmor %vm645_vm11, %vm646_vm10  ;;  %vm1148_vm10 = vcmask 25600  }
 0x6b9   :  { %v641_v19 = vmul.f32 %v1426_v17, %v640_v18  ;;  %v638_v36 = vsel %vm637_vm9, %v1424_v0, %v634_v33 }
 0x6ba   :  { %1239 = vmatmul.msk.bf16.vlgmr.msrb.gmra.mxu0 %vm28_vm0, %v665_v34  ;;  %v651_v30 = vmul.f32 %v638_v36, %v1737_v43  ;;  %v1323_v43 = vld [vmem:[%s1917_s4 + $0x48] sm:$0xff] }
 0x6bb   :  { %v642_v39 = vmul.f32 0.5, %v641_v19  ;;  %792 = vmatpush.bf16.msra.mxu3 %v1323_v43 }
 0x6bc   :  { %v657_v45 = vmul.f32 %v1367_v13, %v651_v30  ;;  %v1370_v30 = vld [vmem:[%s1916_s5 + $0x7] ss:$0 sm:$0xff] }
 0x6bd   :  { %v643_v40 = vsub.f32 1.5, %v642_v39 }
 0x6be   :  { %v1773_v46 = vadd.f32 %v1368_v24, %v657_v45 }
 0x6bf   :  { %v644_v41 = vmul.f32 %v1426_v17, %v643_v40  ;;  %793 = vmatpush.bf16.msra.mxu3 %v1322_v49 }
 0x6c1   :  { %v648_v42 = vsel %vm647_vm12, %v1426_v17, %v644_v41 }
 0x6c2   :  { %v652_v44 = vmul.f32 %v648_v42, %v1743_v29  ;;  %v1321_v29 = vld [vmem:[%s1917_s4 + $0x38] sm:$0xff] }
 0x6c3   :  { %794 = vmatpush.bf16.msra.mxu3 %v1321_v29 }
 0x6c4   :  { %v658_v28 = vmul.f32 %v1367_v13, %v652_v44 }
 0x6c6   :  { %v1775_v47 = vadd.f32 %v1368_v24, %v658_v28 }
 0x6c7   :  { %795 = vmatpush.bf16.msra.mxu3 %v1320_v51 }
 0x6c8   :  { %v666_v48 = vpack.c.bf16 %v1775_v47, %v1773_v46 }
 0x6ca   :  { %1240 = vmatmul.msk.bf16.gmra.mxu0 %vm28_vm0, %v666_v48 }
 0x737   :  { %v700_v50 = vpop.f32.mrf.mxu0 }
 0x738   :  { %v701_v52 = vadd.f32 %v1369_v38, %v700_v50 }
 0x73a   :  { %v710_v53 = vmul.f32 %v701_v52, %v701_v52 }
 0x73c   :  { %v714_v54 = vmul.f32 %v710_v53, %v701_v52 }
 0x73e   :  { %v718_v55 = vmul.f32 0.044715, %v714_v54 }
 0x73f   :  { %v702_v56 = vpop.f32.mrf.mxu0 }
 0x740   :  { %v722_v57 = vadd.f32 %v718_v55, %v701_v52  ;;  %v703_v58 = vadd.f32 %v1369_v38, %v702_v56 }
 0x742   :  { %v726_v35 = vmul.f32 0.7978846, %v722_v57  ;;  %v711_v37 = vmul.f32 %v703_v58, %v703_v58 }
 0x744   :  { %v715_v59 = vmul.f32 %v711_v37, %v703_v58  ;;  %1427 = vtanh.f32 %v726_v35 }
 0x746   :  { %v719_v60 = vmul.f32 0.044715, %v715_v59 }
 0x747   :  { %v705_v61 = vpop.f32.mrf.mxu0 }
 0x748   :  { %v723_v62 = vadd.f32 %v719_v60, %v703_v58  ;;  %v706_v63 = vadd.f32 %v1369_v38, %v705_v61 }
 0x74a   :  { %v727_v1 = vmul.f32 0.7978846, %v723_v62  ;;  %v712_v2 = vmul.f32 %v706_v63, %v706_v63  ;;  %v1428_v3 = vpop.eup %1427 }
 0x74b   :  { %v734_v6 = vadd.f32 1.0, %v1428_v3 }
 0x74c   :  { %1429 = vtanh.f32 %v727_v1  ;;  %v716_v4 = vmul.f32 %v712_v2, %v706_v63 }
 0x74d   :  { %v738_v12 = vmul.f32 0.5, %v734_v6 }
 0x74e   :  { %v720_v5 = vmul.f32 0.044715, %v716_v4 }
 0x74f   :  { %v707_v7 = vpop.f32.mrf.mxu0  ;;  %v742_v21 = vmul.f32 %v738_v12, %v701_v52 }
 0x750   :  { %v724_v8 = vadd.f32 %v720_v5, %v706_v63  ;;  %v708_v9 = vadd.f32 %v1369_v38, %v707_v7 }
 0x752   :  { %v1430_v10 = vpop.eup %1429  ;;  %v728_v0 = vmul.f32 0.7978846, %v724_v8  ;;  %v713_v11 = vmul.f32 %v708_v9, %v708_v9 }
 0x753   :  { %v735_v13 = vadd.f32 1.0, %v1430_v10 }
 0x754   :  { %v717_v15 = vmul.f32 %v713_v11, %v708_v9  ;;  %1431 = vtanh.f32 %v728_v0 }
 0x755   :  { %v739_v16 = vmul.f32 0.5, %v735_v13 }
 0x756   :  { %v721_v20 = vmul.f32 0.044715, %v717_v15 }
 0x757   :  { %v743_v22 = vmul.f32 %v739_v16, %v703_v58 }
 0x758   :  { %v725_v23 = vadd.f32 %v721_v20, %v708_v9 }
 0x759   :  { %v746_v24 = vpack.c.bf16 %v743_v22, %v742_v21 }
 0x75a   :  { %v729_v25 = vmul.f32 0.7978846, %v725_v23  ;;  %v1432_v26 = vpop.eup %1431 }
 0x75b   :  { %1257 = vmatmul.msk.bf16.vlgmr.msra.gmra.mxu3 %vm307_vm15, %v746_v24  ;;  %v736_v27 = vadd.f32 1.0, %v1432_v26 }
 0x75c   :  { %1433 = vtanh.f32 %v729_v25 }
 0x75d   :  { %v740_v18 = vmul.f32 0.5, %v736_v27 }
 0x75f   :  { %v744_v19 = vmul.f32 %v740_v18, %v706_v63 }
 0x762   :  { %v1434_v17 = vpop.eup %1433 }
 0x763   :  { %v737_v33 = vadd.f32 1.0, %v1434_v17 }
 0x765   :  { %v741_v34 = vmul.f32 0.5, %v737_v33 }
 0x767   :  { %v745_v36 = vmul.f32 %v741_v34, %v708_v9 }
 0x769   :  { %v747_v39 = vpack.c.bf16 %v745_v36, %v744_v19 }
 0x76b   :  { %1258 = vmatmul.msk.bf16.gmra.mxu3 %vm307_vm15, %v747_v39 }
 0x7de   :  { %v797_v40 = vpop.f32.mrf.mxu3 }
 0x7df   :  { %v798_v51 = vadd.f32 %v1370_v30, %v797_v40 }
 0x7e6   :  { %v799_v41 = vpop.f32.mrf.mxu3 }
 0x7e7   :  { %v800_v42 = vadd.f32 %v1370_v30, %v799_v41 }
 0x7e9   :  { %v808_v44 = vadd.f32 %v800_v42, %v1766_v32  ;;  %v807_v32 = vadd.f32 %v798_v51, %v1764_v31 }
 0x7eb   :  { %v814_v45 = vsel %vm28_vm0, %v808_v44, 0.0  ;;  %v811_v53 = vsel %vm28_vm0, %v807_v32, 0.0 }
 0x7ec   :  { %815 = vadd.xlane.f32.xlu0 %v814_v45 }
 0x7ee   :  { %v802_v28 = vpop.f32.mrf.mxu3 }
 0x7ef   :  { %v803_v48 = vadd.f32 %v1370_v30, %v802_v28 }
 0x7f1   :  { %v809_v43 = vadd.f32 %v803_v48, %v1773_v46 }
 0x7f3   :  { %v817_v49 = vsel %vm28_vm0, %v809_v43, 0.0 }
 0x7f4   :  { %818 = vadd.xlane.f32.xlu2 %v817_v49 }
 0x7f6   :  { %v804_v29 = vpop.f32.mrf.mxu3 }
 0x7f7   :  { %v805_v38 = vadd.f32 %v1370_v30, %v804_v29 }
 0x7f9   :  { %v810_v50 = vadd.f32 %v805_v38, %v1775_v47  ;;  %v1371_v38 = vld [vmem:[%s1916_s5 + $0x8] ss:$0 sm:$0xff] }
 0x7fb   :  { %v820_v52 = vsel %vm28_vm0, %v810_v50, 0.0 }
 0x7fc   :  { %821 = vadd.xlane.f32.xlu1 %v820_v52 }
 0x804   :  { %812 = vadd.xlane.f32.xlu1 %v811_v53 }
 0x85f   :  { %v816_v54 = vpop.xlane.xlu0 %815 }
 0x860   :  { %v824_v55 = vmul.f32 %v816_v54, %v1509_v14 }
 0x862   :  { %v1809_v46 = vsub.f32 %v808_v44, %v824_v55 }
 0x864   :  { %v832_v56 = vmul.f32 %v1809_v46, %v1809_v46 }
 0x866   :  { %v838_v57 = vsel %vm28_vm0, %v832_v56, 0.0 }
 0x867   :  { %839 = vadd.xlane.f32.xlu1 %v838_v57  ;;  %v819_v47 = vpop.xlane.xlu2 %818 }
 0x868   :  { %v825_v58 = vmul.f32 %v819_v47, %v1509_v14 }
 0x86a   :  { %v1815_v35 = vsub.f32 %v809_v43, %v825_v58 }
 0x86c   :  { %v833_v31 = vmul.f32 %v1815_v35, %v1815_v35 }
 0x86e   :  { %v841_v37 = vsel %vm28_vm0, %v833_v31, 0.0 }
 0x86f   :  { %v822_v59 = vpop.xlane.xlu1 %821  ;;  %842 = vadd.xlane.f32.xlu0 %v841_v37 }
 0x870   :  { %v826_v60 = vmul.f32 %v822_v59, %v1509_v14  ;;  %v911_v59 = vld [vmem:[%s1919_s2] sm:$0x3f] }
 0x872   :  { %v830_v61 = vsub.f32 %v810_v50, %v826_v60  ;;  %v1325_v60 = vld [vmem:[%s1917_s4 + $0x58] sm:$0xff] }
 0x874   :  { %v834_v62 = vmul.f32 %v830_v61, %v830_v61 }
 0x876   :  { %v844_v63 = vsel %vm28_vm0, %v834_v62, 0.0  ;;  %v1329_v62 = vld [vmem:[%s1917_s4 + $0x78] sm:$0xff] }
 0x877   :  { %v813_v1 = vpop.xlane.xlu1 %812  ;;  %845 = vadd.xlane.f32.xlu2 %v844_v63  ;;  %v1328_v63 = vld [vmem:[%s1917_s4 + $0x70] sm:$0xff] }
 0x878   :  { %v823_v2 = vmul.f32 %v813_v1, %v1509_v14  ;;  %v1327_v1 = vld [vmem:[%s1917_s4 + $0x68] sm:$0xff] }
 0x879   :  { %999 = vmatpush.bf16.msrb.mxu2 %v1327_v1 }
 0x87a   :  { %v1823_v3 = vsub.f32 %v807_v32, %v823_v2  ;;  %v1372_v32 = vld [vmem:[%s1916_s5 + $0x9] ss:$0 sm:$0xff] }
 0x87c   :  { %v831_v4 = vmul.f32 %v1823_v3, %v1823_v3 }
 0x87e   :  { %v835_v5 = vsel %vm28_vm0, %v831_v4, 0.0 }
 0x87f   :  { %836 = vadd.xlane.f32.xlu2 %v835_v5  ;;  %v1326_v5 = vld [vmem:[%s1917_s4 + $0x60] sm:$0xff] }
 0x880   :  { %1000 = vmatpush.bf16.msrb.mxu2 %v1326_v5 }
 0x8da   :  { %v840_v6 = vpop.xlane.xlu1 %839 }
 0x8db   :  { %v848_v7 = vmul.f32 %v840_v6, %v1509_v14  ;;  %v1333_v6 = vld [vmem:[%s1917_s4 + $0x98] sm:$0xff] }
 0x8dc   :  { %1075 = vmatpush.bf16.msrb.mxu1 %v1333_v6 }
 0x8dd   :  { %v852_v8 = vadd.f32 1e-12, %v848_v7  ;;  %v1335_v7 = vld [vmem:[%s1917_s4 + $0xa8] sm:$0xff] }
 0x8de   :  { %1137 = vmatpush.bf16.msrb.mxu3 %v1335_v7 }
 0x8df   :  { %1435 = vrsqrt.f32 %v852_v8  ;;  %vm871_vm2 = vweird.f32 %v852_v8 }
 0x8e2   :  { %v843_v9 = vpop.xlane.xlu0 %842 }
 0x8e3   :  { %v849_v10 = vmul.f32 %v843_v9, %v1509_v14  ;;  %v1334_v9 = vld [vmem:[%s1917_s4 + $0xa0] sm:$0xff] }
 0x8e4   :  { %1138 = vmatpush.bf16.msrb.mxu3 %v1334_v9 }
 0x8e5   :  { %v853_v0 = vadd.f32 1e-12, %v849_v10  ;;  %v1436_v11 = vpop.eup %1435  ;;  %v1373_v10 = vld [vmem:[%s1916_s5 + $0xa] ss:$0 sm:$0xff] }
 0x8e6   :  { %v866_v12 = vmul.f32 %v1436_v11, %v852_v8  ;;  %vm872_vm14 = vweird.f32 %v1436_v11  ;;  %v1332_v8 = vld [vmem:[%s1917_s4 + $0x90] sm:$0xff] }
 0x8e7   :  { %1437 = vrsqrt.f32 %v853_v0  ;;  %vm881_vm15 = vweird.f32 %v853_v0  ;;  %vm873_vm4 = vmor %vm871_vm2, %vm872_vm14  ;;  %1076 = vmatpush.bf16.msrb.mxu1 %v1332_v8 }
 0x8e8   :  { %v867_v21 = vmul.f32 %v1436_v11, %v866_v12 }
 0x8ea   :  { %v846_v13 = vpop.xlane.xlu2 %845  ;;  %v868_v24 = vmul.f32 0.5, %v867_v21 }
 0x8eb   :  { %v850_v15 = vmul.f32 %v846_v13, %v1509_v14 }
 0x8ec   :  { %v869_v34 = vsub.f32 1.5, %v868_v24 }
 0x8ed   :  { %v1438_v16 = vpop.eup %1437  ;;  %v854_v20 = vadd.f32 1e-12, %v850_v15 }
 0x8ee   :  { %v876_v22 = vmul.f32 %v1438_v16, %v853_v0  ;;  %vm882_vm13 = vweird.f32 %v1438_v16  ;;  %v870_v40 = vmul.f32 %v1436_v11, %v869_v34 }
 0x8ef   :  { %1439 = vrsqrt.f32 %v854_v20  ;;  %vm883_vm1 = vmor %vm881_vm15, %vm882_vm13  ;;  %vm891_vm5 = vweird.f32 %v854_v20 }
 0x8f0   :  { %v877_v23 = vmul.f32 %v1438_v16, %v876_v22 }
 0x8f2   :  { %v878_v25 = vmul.f32 0.5, %v877_v23  ;;  %v837_v26 = vpop.xlane.xlu2 %836 }
 0x8f3   :  { %v847_v27 = vmul.f32 %v837_v26, %v1509_v14  ;;  %v874_v14 = vsel %vm873_vm4, %v1436_v11, %v870_v40  ;;  %v1331_v26 = vld [vmem:[%s1917_s4 + $0x88] sm:$0xff] }
 0x8f4   :  { %v879_v17 = vsub.f32 1.5, %v878_v25  ;;  %v896_v50 = vmul.f32 %v874_v14, %v1809_v46  ;;  %1103 = vmatpush.bf16.msra.mxu2 %v1331_v26 }
 0x8f5   :  { %v1440_v33 = vpop.eup %1439  ;;  %v851_v18 = vadd.f32 1e-12, %v847_v27  ;;  %v1330_v27 = vld [vmem:[%s1917_s4 + $0x80] sm:$0xff] }
 0x8f6   :  { %v886_v19 = vmul.f32 %v1440_v33, %v854_v20  ;;  %v880_v36 = vmul.f32 %v1438_v16, %v879_v17  ;;  %vm892_vm3 = vweird.f32 %v1440_v33  ;;  %v902_v56 = vmul.f32 %v1371_v38, %v896_v50  ;;  %v1375_v17 = vld [vmem:[%s1916_s5 + $0xb] ss:$0 sm:$0xff] }
 0x8f7   :  { %1441 = vrsqrt.f32 %v851_v18  ;;  %vm893_vm6 = vmor %vm891_vm5, %vm892_vm3  ;;  %vm861_vm8 = vweird.f32 %v851_v18 }
 0x8f8   :  { %v887_v39 = vmul.f32 %v1440_v33, %v886_v19  ;;  %v884_v41 = vsel %vm883_vm1, %v1438_v16, %v880_v36  ;;  %v1374_v16 = vld [vmem:[%s1916_s5 + $0xc] ss:$0 sm:$0xff]  ;;  %1104 = vmatpush.bf16.msra.mxu2 %v1330_v27 }
 0x8f9   :  { %v897_v48 = vmul.f32 %v884_v41, %v1815_v35  ;;  %v908_v35 = vadd.f32 %v1372_v32, %v902_v56  ;;  %v1161_v56 = vld [vmem:[%s1921_s3] sm:$0x3] }
 0x8fa   :  { %v888_v30 = vmul.f32 0.5, %v887_v39 }
 0x8fb   :  { %v903_v53 = vmul.f32 %v1371_v38, %v897_v48 }
 0x8fc   :  { %v889_v42 = vsub.f32 1.5, %v888_v30 }
 0x8fd   :  { %v1442_v44 = vpop.eup %1441  ;;  %v909_v47 = vadd.f32 %v1372_v32, %v903_v53 }
 0x8fe   :  { %v890_v45 = vmul.f32 %v1440_v33, %v889_v42  ;;  %v856_v28 = vmul.f32 %v1442_v44, %v851_v18  ;;  %vm862_vm7 = vweird.f32 %v1442_v44  ;;  %v1457_v42 = vmov 0.0  }
 0x8ff   :  { %vm863_vm9 = vmor %vm861_vm8, %vm862_vm7  ;;  %1176 = vst [vmem:[%s1920_s6] sm:$0xff] %v1457_v42 }
 0x900   :  { %v894_v43 = vsel %vm893_vm6, %v1440_v33, %v890_v45  ;;  %v857_v49 = vmul.f32 %v1442_v44, %v856_v28  ;;  %v1376_v45 = vld [vmem:[%s1916_s5 + $0xd] ss:$0 sm:$0xff] }
 0x901   :  { %v898_v29 = vmul.f32 %v894_v43, %v830_v61  ;;  %v1324_v61 = vld [vmem:[%s1917_s4 + $0x50] sm:$0xff] }
 0x902   :  { %v858_v51 = vmul.f32 0.5, %v857_v49 }
 0x903   :  { %v904_v52 = vmul.f32 %v1371_v38, %v898_v29 }
 0x904   :  { %v859_v54 = vsub.f32 1.5, %v858_v51 }
 0x905   :  { %v910_v55 = vadd.f32 %v1372_v32, %v904_v52 }
 0x906   :  { %v860_v57 = vmul.f32 %v1442_v44, %v859_v54 }
 0x907   :  { %927 = vmatpush.msra.mxu0 %v910_v55 }
 0x908   :  { %v864_v58 = vsel %vm863_vm9, %v1442_v44, %v860_v57 }
 0x909   :  { %928 = vmatpush.msra.mxu0 %v909_v47  ;;  %v895_v46 = vmul.f32 %v864_v58, %v1823_v3 }
 0x90b   :  { %929 = vmatpush.msra.mxu0 %v908_v35  ;;  %v901_v31 = vmul.f32 %v1371_v38, %v895_v46 }
 0x90d   :  { %v907_v37 = vadd.f32 %v1372_v32, %v901_v31 }
 0x90f   :  { %930 = vmatpush.msra.mxu0 %v907_v37 }
 0x910   :  { %1259 = vmatmul.msk.f32.vlgmr.msra.gmra.mxu0 %vm28_vm0, %v911_v59 }
 0x911   :  { %963 = vmatpush.bf16.msrb.mxu0 %v1325_v60 }
 0x915   :  { %964 = vmatpush.bf16.msrb.mxu0 %v1324_v61 }
 0x919   :  { %1036 = vmatpush.bf16.msra.mxu0 %v1329_v62 }
 0x91d   :  { %1037 = vmatpush.bf16.msra.mxu0 %v1328_v63 }
 0x98d   :  { %v932_v2 = vpop.f32.mrf.mxu0 }
 0x98e   :  { %v935_v3 = vpack.c.bf16 %v932_v2, %v932_v2 }
 0x990   :  { %1268 = vmatmul.msk.bf16.vlgmr.msrb.gmra.mxu0 %vm28_vm0, %v935_v3  ;;  %v1014_v4 = vrot.slane %v935_v3, 1 }
 0x9a0   :  { %1286 = vmatmul.msk.bf16.vlgmr.msra.gmra.mxu0 %vm28_vm0, %v1014_v4 }
 0xa0d   :  { %v966_v0 = vpop.f32.mrf.mxu0 }
 0xa0e   :  { %v967_v11 = vadd.f32 %v1373_v10, %v966_v0 }
 0xa10   :  { %1443 = vtanh.f32 %v967_v11 }
 0xa15   :  { %v968_v12 = vpop.f32.mrf.mxu0 }
 0xa16   :  { %v1444_v13 = vpop.eup %1443 }
 0xa17   :  { %v971_v15 = vpack.c.bf16 %v1444_v13, %v1444_v13 }
 0xa19   :  { %1277 = vmatmul.msk.bf16.vlgmr.msrb.gmra.mxu2 %vm28_vm0, %v971_v15 }
 0xa1d   :  { %v1039_v20 = vpop.f32.mrf.mxu0 }
 0xa1e   :  { %v1040_v21 = vadd.f32 %v1374_v16, %v1039_v20 }
 0xa20   :  { %1445 = vtanh.f32 %v1040_v21 }
 0xa25   :  { %v1041_v22 = vpop.f32.mrf.mxu0 }
 0xa26   :  { %v1446_v23 = vpop.eup %1445 }
 0xa27   :  { %v1049_v24 = vpack.c.bf16 %v1446_v23, %v1446_v23 }
 0xa29   :  { %v1115_v25 = vrot.slane %v1049_v24, 1  ;;  %1295 = vmatmul.msk.bf16.vlgmr.msrb.gmra.mxu1 %vm28_vm0, %v1049_v24 }
 0xa2b   :  { %1313 = vmatmul.msk.bf16.vlgmr.msrb.gmra.mxu3 %vm28_vm0, %v1115_v25 }
 0xa9c   :  { %v1002_v33 = vpop.f32.mrf.mxu2 }
 0xa9d   :  { %v1003_v18 = vadd.f32 %v1375_v17, %v1002_v33 }
 0xa9f   :  { %1447 = vtanh.f32 %v1003_v18 }
 0xaa4   :  { %v1004_v34 = vpop.f32.mrf.mxu2 }
 0xaa5   :  { %v1448_v19 = vpop.eup %1447 }
 0xaa6   :  { %v1044_v36 = vpack.c.bf16 %v1448_v19, %v1448_v19  ;;  %v1078_v39 = vpop.f32.mrf.mxu1 }
 0xaa8   :  { %1304 = vmatmul.msk.bf16.vlgmr.msra.gmra.mxu2 %vm28_vm0, %v1044_v36  ;;  %vm1179_vm0 = vcmask 24576  }
 0xaae   :  { %v1080_v40 = vpop.f32.mrf.mxu1  ;;  %v1140_v30 = vpop.f32.mrf.mxu3 }
 0xab6   :  { %v1142_v41 = vpop.f32.mrf.mxu3 }
 0xb2b   :  { %v1106_v44 = vpop.f32.mrf.mxu2 }
 0xb2c   :  { %v1107_v14 = vadd.f32 %v1106_v44, %v1078_v39 }
 0xb2e   :  { %v1144_v28 = vadd.f32 %v1140_v30, %v1107_v14 }
 0xb30   :  { %v1147_v48 = vadd.f32 %v1376_v45, %v1144_v28 }
 0xb32   :  { %v1149_v43 = vsel %vm1148_vm10, %v1147_v48, -inf  ;;  %1177 = vst.msk [vmem:[%s1920_s6] sm:$0x3] %vm1148_vm10, %v1147_v48 }
 0xb33   :  { %1150 = vmax.xlane.f32.xlu0 %v1149_v43  ;;  %v1108_v49 = vpop.f32.mrf.mxu2 }
 0xba6   :  { %v1151_v29 = vpop.xlane.xlu0 %1150 }
 0xba7   :  { %v1152_v38 = vsub.f32 %v1147_v48, %v1151_v29 }
 0xba9   :  { %v1153_v50 = vmul.f32 1.442695, %v1152_v38 }
 0xbab   :  { %1449 = vpow2.f32 %v1153_v50 }
 0xbb1   :  { %v1450_v51 = vpop.eup %1449 }
 0xbb2   :  { %v1155_v52 = vsel %vm1148_vm10, %v1450_v51, 0.0 }
 0xbb3   :  { %1156 = vadd.xlane.f32.xlu1 %v1155_v52 }
 0xc26   :  { %v1157_v32 = vpop.xlane.xlu1 %1156 }
 0xc27   :  { %1451 = vlog2.f32 %v1157_v32 }
 0xc2d   :  { %v1452_v53 = vpop.eup %1451 }
 0xc2e   :  { %v1159_v54 = vmul.f32 0.6931472, %v1452_v53 }
 0xc30   :  { %v1160_v55 = vadd.f32 %v1159_v54, %v1151_v29 }
 0xc32   :  { %v1162_v57 = vsub.f32 %v1147_v48, %v1160_v55 }
 0xc34   :  { %v1163_v47 = vmul.f32 %v1162_v57, %v1161_v56 }
 0xc36   :  { %v1164_v58 = vsel %vm1148_vm10, %v1163_v47, 0.0 }
 0xc37   :  { %1165 = vadd.xlane.f32.xlu2 %v1164_v58 }
 0xcaa   :  { %v1166_v35 = vpop.xlane.xlu2 %1165 }
 0xcab   :  { %v1167_v46 = vrot.slane %v1166_v35, 4 }
 0xcad   :  { %v1168_v31 = vadd.f32 %v1167_v46, %v1166_v35 }
 0xcaf   :  { %v1169_v37 = vrot.slane %v1168_v31, 2 }
 0xcb1   :  { %v1170_v59 = vadd.f32 %v1169_v37, %v1168_v31 }
 0xcb3   :  { %v1171_v60 = vrot.slane %v1170_v59, 1 }
 0xcb5   :  { %v1172_v61 = vadd.f32 %v1171_v60, %v1170_v59 }
 0xcb7   :  { %1336 = vpush %v1172_v61 }
 0xce8   :  { %s1337_s21 = spop %1336 }
 0xce9   :  { %s1174_s22 = ssub.f32 0.0, %s1337_s21 }
 0xceb   :  { %s1175_s23 = smul.f32 0.5, %s1174_s22 }
 0xced   :  { %v1178_v62 = vstv %s1175_s23 }
 0xcee   :  { %1180 = vst.msk [vmem:[%s1920_s6 + $0x2] sm:$0x1] %vm1179_vm0, %v1178_v62 }

</bundles_post_ra>
